<compile_context>
chip_gen: v6e
topology: v6e:2x2x1
jax: 0.10.0
libtpu: 0.0.40
codegen_flags: <defaults>
</compile_context>

<pallas_src>
from functools import partial

import jax
import jax.numpy as jnp
from jax.experimental import pallas as pl
from jax.experimental.pallas import tpu as pltpu

LANE = 128   # channels are zero-padded to a multiple of the lane width
SUB = 8      # sublane alignment for time-dim tiles / halos


def _round_up(n, m):
    return ((n + m - 1) // m) * m


# ---------------------------------------------------------------------------
# In-kernel helpers
# ---------------------------------------------------------------------------
def _causal_dconv(win, w_ref, b_ref, *, K, d):
    """Dilated causal conv over a fixed-width time window.

    win   : (W, Cin) compute-dtype window. Rows whose full left context is not
            in the window produce garbage; callers only consume rows that have
            full context (correctness-frontier argument) or mask them.
    w_ref : (K, Cin, Cout) weights;  b_ref: (1, Cout) f32 bias.
    Returns (W, Cout) float32.  Per-tap accumulating MXU dots (no K*C slab).
    """
    pad = (K - 1) * d
    acc = None
    for k in range(K):
        shift = pad - k * d                      # static
        tap = win if shift == 0 else jnp.roll(win, shift, axis=0)
        out = jnp.dot(tap, w_ref[k], preferred_element_type=jnp.float32)
        acc = out if acc is None else acc + out
    return acc + b_ref[...]


def _tcn_stack_kernel(*refs, K, halo_pad, layer_meta, cdt):
    """One grid step = one (batch, time-tile) pair; runs the WHOLE TCN stack."""
    refs = list(refs)
    x_ref = refs.pop(0)                               # (1, t_tile, C0)
    xh_ref = refs.pop(0) if halo_pad > 0 else None    # (1, 1, halo_pad, C0)
    o_ref = refs.pop()                                # (1, t_tile, CL)
    wrefs = refs                                      # per-layer weights/biases

    is_first = pl.program_id(1) == 0

    x_cur = x_ref[0]                                  # stays in compute dtype
    if halo_pad > 0:
        act = jnp.concatenate([xh_ref[0, 0], x_cur], axis=0)   # (W, C0)
    else:
        act = x_cur
    act = act.astype(cdt)
    W = act.shape[0]

    # Mask column: zero the rows corresponding to t < 0 — only on the first
    # time tile (on other tiles the halo holds real left context).
    if halo_pad > 0:
        row = jax.lax.broadcasted_iota(jnp.int32, (W, 1), 0)
        keep = jnp.where(jnp.logical_and(row < halo_pad, is_first), 0.0, 1.0)

    def mask_virtual(a_f32):
        return a_f32 * keep if halo_pad > 0 else a_f32

    n_layers = len(layer_meta)
    wi = 0
    for li, (d, has_ds) in enumerate(layer_meta):
        w1, b1, w2, b2 = wrefs[wi], wrefs[wi + 1], wrefs[wi + 2], wrefs[wi + 3]
        wi += 4
        if has_ds:
            wd, bd = wrefs[wi], wrefs[wi + 1]
            wi += 2

        # conv1 + bias + ReLU   (dropout is identity in eval mode)
        h = jnp.maximum(_causal_dconv(act, w1, b1, K=K, d=d), 0.0)
        # conv2 zero-pads its input at t < 0: enforce on the first tile.
        h = mask_virtual(h).astype(cdt)
        # TODO(synk): training-mode dropout between conv1 and conv2 not implemented.

        # conv2 + bias, residual branch, final ReLU
        y = _causal_dconv(h, w2, b2, K=K, d=d)
        if has_ds:
            res = jnp.dot(act, wd[...], preferred_element_type=jnp.float32) + bd[...]
        else:
            res = act.astype(jnp.float32)
        out = jnp.maximum(y + res, 0.0)
        if li + 1 < n_layers:                # next block's conv1 input must be
            out = mask_virtual(out)          # zero at t < 0 on the first tile
        act = out.astype(cdt)

    o_ref[0] = act[halo_pad:, :].astype(o_ref.dtype)


# ---------------------------------------------------------------------------
# Tiling / VMEM planning
# ---------------------------------------------------------------------------
def _plan(T, K, chans_p, has_ds_list, halo_pad, itemsize):
    """Choose the time tile + vmem limit from the actual working-set sizes."""
    n_layers = len(chans_p) - 1
    cmax = max(chans_p)
    c0, cL = chans_p[0], chans_p[-1]
    wbytes = 0
    for i in range(n_layers):
        ci, co = chans_p[i], chans_p[i + 1]
        wbytes += (K * ci * co + K * co * co) * itemsize + 2 * co * 4
        if has_ds_list[i]:
            wbytes += ci * co * itemsize + co * 4

    def est(tt):
        w = tt + halo_pad
        io = 2 * (tt * c0 + halo_pad * c0 + tt * cL) * itemsize   # double-buffered DMAs
        mid = 6 * w * cmax * 4                                    # live f32 intermediates
        return io + mid + 2 * wbytes

    budget = 20 << 20          # conservative: fits v7x's 64 MiB with headroom
    t_tile = SUB
    for cand in (1024, 512, 256, 128, 64, 32, 16, 8):
        if cand <= _round_up(T, SUB) and est(cand) <= budget:
            t_tile = cand
            break
    t_tile = max(t_tile, halo_pad, SUB)      # halo array construction needs halo_pad <= t_tile
    T_pad = _round_up(T, t_tile)
    nt = T_pad // t_tile
    vmem_limit = int(min(48 << 20, max(24 << 20, 2 * est(t_tile))))
    return t_tile, nt, T_pad, vmem_limit


# ---------------------------------------------------------------------------
# Wrapper: the whole encoder in ONE pallas_call
# ---------------------------------------------------------------------------
def tcn_encoder(x, params, *, kernel_size, out_channels, compute_dtype=jnp.bfloat16):
    """x: (B, T, in_dim) -> (B, T, out_channels).

    `params` is the output of `prepare_params` (channel-padded weights).
    The PyTorch permute(0,2,1) pair is absorbed by working in (B, T, C).
    """
    B, T, cin = x.shape
    K = kernel_size
    L = len(params)
    c0_p = _round_up(cin, LANE)
    chans_p = [c0_p] + [p["b1"].shape[-1] for p in params]
    has_ds_list = ["wd" in p for p in params]

    total_halo = sum(2 * (K - 1) * (2 ** i) for i in range(L))
    halo_pad = _round_up(total_halo, SUB) if total_halo > 0 else 0

    itemsize = jnp.dtype(compute_dtype).itemsize
    t_tile, nt, T_pad, vmem_limit = _plan(T, K, chans_p, has_ds_list, halo_pad, itemsize)

    # Channel pad once, cast to compute dtype (bf16 halves HBM traffic & VMEM).
    xp = jnp.pad(x, ((0, 0), (0, 0), (0, c0_p - cin))).astype(compute_dtype)
    if T_pad > T:
        xp = jnp.pad(xp, ((0, 0), (0, T_pad - T), (0, 0)))

    args = [xp]
    in_specs = [pl.BlockSpec((1, t_tile, c0_p), lambda b, t: (b, t, 0))]

    if halo_pad > 0:
        # Halo rows preceding each time tile (zeros in front of tile 0) —
        # a tiny (B, nt, halo_pad, C0) array, built once, instead of
        # re-DMAing the entire previous tile per grid step.
        xfull = jnp.pad(xp, ((0, 0), (halo_pad, 0), (0, 0)))[:, : nt * t_tile, :]
        xh = xfull.reshape(B, nt, t_tile, c0_p)[:, :, :halo_pad, :]
        args.append(xh)
        in_specs.append(pl.BlockSpec((1, 1, halo_pad, c0_p),
                                     lambda b, t: (b, t, 0, 0)))

    def _const_spec(arr):
        nd = arr.ndim
        return pl.BlockSpec(arr.shape, lambda b, t, _nd=nd: (0,) * _nd)

    layer_meta = []
    for i, p in enumerate(params):
        layer_meta.append((2 ** i, "wd" in p))
        for name in ("w1", "b1", "w2", "b2"):
            a = p[name].astype(compute_dtype) if name[0] == "w" else p[name]
            args.append(a)
            in_specs.append(_const_spec(a))
        if "wd" in p:
            a = p["wd"].astype(compute_dtype)
            args.append(a); in_specs.append(_const_spec(a))
            args.append(p["bd"]); in_specs.append(_const_spec(p["bd"]))

    kern = partial(_tcn_stack_kernel, K=K, halo_pad=halo_pad,
                   layer_meta=tuple(layer_meta), cdt=compute_dtype)

    out = pl.pallas_call(
        kern,
        out_shape=jax.ShapeDtypeStruct((B, T_pad, chans_p[-1]), compute_dtype),
        grid=(B, nt),
        in_specs=in_specs,
        out_specs=pl.BlockSpec((1, t_tile, chans_p[-1]), lambda b, t: (b, t, 0)),
        compiler_params=pltpu.CompilerParams(
            dimension_semantics=("parallel", "parallel"),
            vmem_limit_bytes=vmem_limit,
        ),
    )(*args)

    return out[:, :T, :out_channels].astype(x.dtype)


# ---------------------------------------------------------------------------
# Parameters (PyTorch-equivalent init + channel padding for the kernel)
# ---------------------------------------------------------------------------
def init_params(key, in_channels, hidden_channels, kernel_size):
    """Conv1d-style init (uniform +/- 1/sqrt(fan_in*K)), weight layout (K, Cin, Cout)."""
    params = []
    for i, out_ch in enumerate(hidden_channels):
        in_ch = in_channels if i == 0 else hidden_channels[i - 1]
        key, k1, k2, k3, k4, k5, k6 = jax.random.split(key, 7)
        b1 = 1.0 / jnp.sqrt(in_ch * kernel_size)
        b2 = 1.0 / jnp.sqrt(out_ch * kernel_size)
        p = {
            "w1": jax.random.uniform(k1, (kernel_size, in_ch, out_ch), jnp.float32, -b1, b1),
            "b1": jax.random.uniform(k2, (out_ch,), jnp.float32, -b1, b1),
            "w2": jax.random.uniform(k3, (kernel_size, out_ch, out_ch), jnp.float32, -b2, b2),
            "b2": jax.random.uniform(k4, (out_ch,), jnp.float32, -b2, b2),
        }
        if in_ch != out_ch:
            bd = 1.0 / jnp.sqrt(in_ch)
            p["wd"] = jax.random.uniform(k5, (in_ch, out_ch), jnp.float32, -bd, bd)
            p["bd"] = jax.random.uniform(k6, (out_ch,), jnp.float32, -bd, bd)
        params.append(p)
    return params


def prepare_params(raw_params):
    """Zero-pad channels to multiples of LANE; keep (K, Cin_p, Cout_p) layout."""
    prepped = []
    for p in raw_params:
        K, cin, cout = p["w1"].shape
        cin_p, cout_p = _round_up(cin, LANE), _round_up(cout, LANE)
        f32 = jnp.float32
        q = {
            "w1": jnp.zeros((K, cin_p, cout_p), f32).at[:, :cin, :cout].set(p["w1"]),
            "b1": jnp.zeros((1, cout_p), f32).at[0, :cout].set(p["b1"]),
            "w2": jnp.zeros((K, cout_p, cout_p), f32).at[:, :cout, :cout].set(p["w2"]),
            "b2": jnp.zeros((1, cout_p), f32).at[0, :cout].set(p["b2"]),
        }
        if "wd" in p:
            q["wd"] = jnp.zeros((cin_p, cout_p), f32).at[:cin, :cout].set(p["wd"])
            q["bd"] = jnp.zeros((1, cout_p), f32).at[0, :cout].set(p["bd"])
        prepped.append(q)
    return prepped


# ---------------------------------------------------------------------------
# Pure-JAX reference (unpadded, f32) for correctness checking
# ---------------------------------------------------------------------------
def _ref_causal_conv(x, w, b, d):
    K = w.shape[0]
    pad = (K - 1) * d
    T = x.shape[1]
    xp = jnp.pad(x, ((0, 0), (pad, 0), (0, 0)))
    acc = jnp.zeros(x.shape[:2] + (w.shape[-1],), jnp.float32)
    for k in range(K):
        acc = acc + jnp.einsum("btc,co->bto", xp[:, k * d: k * d + T, :], w[k],
                               precision=jax.lax.Precision.HIGHEST)
    return acc + b


def tcn_encoder_ref(x, raw_params, *, kernel_size):
    for i, p in enumerate(raw_params):
        d = 2 ** i
        h = jax.nn.relu(_ref_causal_conv(x, p["w1"], p["b1"], d))
        y = _ref_causal_conv(h, p["w2"], p["b2"], d)
        if "wd" in p:
            res = jnp.einsum("btc,co->bto", x, p["wd"],
                             precision=jax.lax.Precision.HIGHEST) + p["bd"]
        else:
            res = x
        x = jax.nn.relu(y + res)
    return x


# ---------------------------------------------------------------------------
# Self-test
# ---------------------------------------------------------------------------
def _run_case(B, T, in_ch, hidden, K):
    key = jax.random.PRNGKey(0)
    key, xk = jax.random.split(key)
    x = jax.random.normal(xk, (B, T, in_ch), jnp.float32)
    raw = init_params(key, in_ch, hidden, K)
    params = prepare_params(raw)
    ref = tcn_encoder_ref(x, raw, kernel_size=K)

    # f32 compute path: tight check of halo / masking / fusion logic.
    fwd32 = jax.jit(partial(tcn_encoder, kernel_size=K, out_channels=hidden[-1],
                            compute_dtype=jnp.float32))
    out32 = jax.block_until_ready(fwd32(x, params))
    assert out32.shape == (B, T, hidden[-1]), out32.shape
    err32 = float(jnp.max(jnp.abs(out32 - ref)))
    assert err32 < 2e-2, f"f32 path: max |pallas - ref| = {err32}"

    # bf16 compute path (default, MXU-native): looser tolerance.
    fwd16 = jax.jit(partial(tcn_encoder, kernel_size=K, out_channels=hidden[-1]))
    out16 = jax.block_until_ready(fwd16(x, params))
    assert out16.shape == (B, T, hidden[-1]), out16.shape
    assert bool(jnp.all(jnp.isfinite(out16)))
    err16 = float(jnp.max(jnp.abs(out16.astype(jnp.float32) - ref)))
    assert err16 < 2e-1, f"bf16 path: max |pallas - ref| = {err16}"
    return out16


if __name__ == "__main__":
    # (B, seq_len, in_dim) inputs, consistent with the module's forward.
    _run_case(B=2, T=16, in_ch=4, hidden=[8, 16], K=3)       # single-tile path
    _run_case(B=2, T=200, in_ch=4, hidden=[8, 8], K=3)       # multi-tile halo + T padding + identity residual
    _run_case(B=1, T=384, in_ch=4, hidden=[8, 16, 16], K=3)  # 3 layers, dilation 4, multi-tile
    print("KERNEL_OK")
</pallas_src>

<mosaic_0001>
module attributes {stable_mosaic.version = 11 : i64} {
  func.func @_tcn_stack_kernel(%arg0: i32, %arg1: i32, %arg2: memref<1x16x128xf32, #tpu.memory_space<vmem>>, %arg3: memref<1x1x16x128xf32, #tpu.memory_space<vmem>>, %arg4: memref<3x128x128xf32, #tpu.memory_space<vmem>>, %arg5: memref<1x128xf32, #tpu.memory_space<vmem>>, %arg6: memref<3x128x128xf32, #tpu.memory_space<vmem>>, %arg7: memref<1x128xf32, #tpu.memory_space<vmem>>, %arg8: memref<128x128xf32, #tpu.memory_space<vmem>>, %arg9: memref<1x128xf32, #tpu.memory_space<vmem>>, %arg10: memref<3x128x128xf32, #tpu.memory_space<vmem>>, %arg11: memref<1x128xf32, #tpu.memory_space<vmem>>, %arg12: memref<3x128x128xf32, #tpu.memory_space<vmem>>, %arg13: memref<1x128xf32, #tpu.memory_space<vmem>>, %arg14: memref<128x128xf32, #tpu.memory_space<vmem>>, %arg15: memref<1x128xf32, #tpu.memory_space<vmem>>, %arg16: memref<1x16x128xf32, #tpu.memory_space<vmem>>) attributes {dimension_semantics = [#tpu.dimension_semantics<parallel>, #tpu.dimension_semantics<parallel>], iteration_bounds = array<i64: 2, 1>, scalar_prefetch = 0 : i64, scratch_operands = 0 : i64, tpu.core_type = #tpu.core_type<tc>, window_params = [{transform_indices = @transform_0, window_bounds = array<i64: 1, 16, 128>}, {transform_indices = @transform_1, window_bounds = array<i64: 1, 1, 16, 128>}, {pipeline_mode = #tpu.pipeline_mode<synchronous>, transform_indices = @transform_2, window_bounds = array<i64: 3, 128, 128>}, {pipeline_mode = #tpu.pipeline_mode<synchronous>, transform_indices = @transform_3, window_bounds = array<i64: 1, 128>}, {pipeline_mode = #tpu.pipeline_mode<synchronous>, transform_indices = @transform_4, window_bounds = array<i64: 3, 128, 128>}, {pipeline_mode = #tpu.pipeline_mode<synchronous>, transform_indices = @transform_5, window_bounds = array<i64: 1, 128>}, {pipeline_mode = #tpu.pipeline_mode<synchronous>, transform_indices = @transform_6, window_bounds = array<i64: 128, 128>}, {pipeline_mode = #tpu.pipeline_mode<synchronous>, transform_indices = @transform_7, window_bounds = array<i64: 1, 128>}, {pipeline_mode = #tpu.pipeline_mode<synchronous>, transform_indices = @transform_8, window_bounds = array<i64: 3, 128, 128>}, {pipeline_mode = #tpu.pipeline_mode<synchronous>, transform_indices = @transform_9, window_bounds = array<i64: 1, 128>}, {pipeline_mode = #tpu.pipeline_mode<synchronous>, transform_indices = @transform_10, window_bounds = array<i64: 3, 128, 128>}, {pipeline_mode = #tpu.pipeline_mode<synchronous>, transform_indices = @transform_11, window_bounds = array<i64: 1, 128>}, {pipeline_mode = #tpu.pipeline_mode<synchronous>, transform_indices = @transform_12, window_bounds = array<i64: 128, 128>}, {pipeline_mode = #tpu.pipeline_mode<synchronous>, transform_indices = @transform_13, window_bounds = array<i64: 1, 128>}, {transform_indices = @transform_14, window_bounds = array<i64: 1, 16, 128>}]} {
    %c0_i32 = arith.constant 0 : i32
    %0 = arith.cmpi eq, %arg1, %c0_i32 : i32
    %c0 = arith.constant 0 : index
    %c0_0 = arith.constant 0 : index
    %c0_1 = arith.constant 0 : index
    %1 = vector.load %arg2[%c0, %c0_0, %c0_1] : memref<1x16x128xf32, #tpu.memory_space<vmem>>, vector<1x16x128xf32>
    %2 = vector.shape_cast %1 : vector<1x16x128xf32> to vector<16x128xf32>
    %c0_2 = arith.constant 0 : index
    %c0_3 = arith.constant 0 : index
    %c0_4 = arith.constant 0 : index
    %c0_5 = arith.constant 0 : index
    %3 = vector.load %arg3[%c0_2, %c0_3, %c0_4, %c0_5] : memref<1x1x16x128xf32, #tpu.memory_space<vmem>>, vector<1x1x16x128xf32>
    %4 = vector.shape_cast %3 : vector<1x1x16x128xf32> to vector<16x128xf32>
    %5 = tpu.concatenate %4, %2 in 0 : vector<16x128xf32>, vector<16x128xf32> -> vector<32x128xf32>
    %6 = tpu.iota {dimensions = array<i32: 0>} : vector<32x1xi32>
    %c16_i32 = arith.constant 16 : i32
    %7 = vector.broadcast %c16_i32 : i32 to vector<32x1xi32>
    %8 = arith.cmpi slt, %6, %7 : vector<32x1xi32>
    %9 = vector.broadcast %0 : i1 to vector<32x1xi1>
    %10 = arith.andi %8, %9 : vector<32x1xi1>
    %cst = arith.constant 0.000000e+00 : f32
    %cst_6 = arith.constant 1.000000e+00 : f32
    %11 = vector.broadcast %cst : f32 to vector<32x1xf32>
    %12 = vector.broadcast %cst_6 : f32 to vector<32x1xf32>
    %13 = arith.select %10, %11, %12 : vector<32x1xi1>, vector<32x1xf32>
    %14 = vector.extract_strided_slice %5 {offsets = [30, 0], sizes = [2, 128], strides = [1, 1]} : vector<32x128xf32> to vector<2x128xf32>
    %15 = vector.extract_strided_slice %5 {offsets = [0, 0], sizes = [30, 128], strides = [1, 1]} : vector<32x128xf32> to vector<30x128xf32>
    %16 = tpu.concatenate %14, %15 in 0 : vector<2x128xf32>, vector<30x128xf32> -> vector<32x128xf32>
    %c0_7 = arith.constant 0 : index
    %c0_8 = arith.constant 0 : index
    %c0_9 = arith.constant 0 : index
    %17 = vector.load %arg4[%c0_7, %c0_8, %c0_9] : memref<3x128x128xf32, #tpu.memory_space<vmem>>, vector<1x128x128xf32>
    %18 = vector.shape_cast %17 : vector<1x128x128xf32> to vector<128x128xf32>
    %cst_10 = arith.constant dense<0.000000e+00> : vector<32x128xf32>
    %19 = tpu.matmul %16, %18, %cst_10 {dimension_numbers = #tpu.dot_dimension_numbers<[1], [0], [0], [1], [0, 0, 1, 1], [], []>} : vector<32x128xf32>, vector<128x128xf32>, vector<32x128xf32> -> vector<32x128xf32>
    %20 = vector.extract_strided_slice %5 {offsets = [31, 0], sizes = [1, 128], strides = [1, 1]} : vector<32x128xf32> to vector<1x128xf32>
    %21 = vector.extract_strided_slice %5 {offsets = [0, 0], sizes = [31, 128], strides = [1, 1]} : vector<32x128xf32> to vector<31x128xf32>
    %22 = tpu.concatenate %20, %21 in 0 : vector<1x128xf32>, vector<31x128xf32> -> vector<32x128xf32>
    %c1 = arith.constant 1 : index
    %c0_11 = arith.constant 0 : index
    %c0_12 = arith.constant 0 : index
    %23 = vector.load %arg4[%c1, %c0_11, %c0_12] : memref<3x128x128xf32, #tpu.memory_space<vmem>>, vector<1x128x128xf32>
    %24 = vector.shape_cast %23 : vector<1x128x128xf32> to vector<128x128xf32>
    %cst_13 = arith.constant dense<0.000000e+00> : vector<32x128xf32>
    %25 = tpu.matmul %22, %24, %cst_13 {dimension_numbers = #tpu.dot_dimension_numbers<[1], [0], [0], [1], [0, 0, 1, 1], [], []>} : vector<32x128xf32>, vector<128x128xf32>, vector<32x128xf32> -> vector<32x128xf32>
    %26 = arith.addf %19, %25 : vector<32x128xf32>
    %c2 = arith.constant 2 : index
    %c0_14 = arith.constant 0 : index
    %c0_15 = arith.constant 0 : index
    %27 = vector.load %arg4[%c2, %c0_14, %c0_15] : memref<3x128x128xf32, #tpu.memory_space<vmem>>, vector<1x128x128xf32>
    %28 = vector.shape_cast %27 : vector<1x128x128xf32> to vector<128x128xf32>
    %cst_16 = arith.constant dense<0.000000e+00> : vector<32x128xf32>
    %29 = tpu.matmul %5, %28, %cst_16 {dimension_numbers = #tpu.dot_dimension_numbers<[1], [0], [0], [1], [0, 0, 1, 1], [], []>} : vector<32x128xf32>, vector<128x128xf32>, vector<32x128xf32> -> vector<32x128xf32>
    %30 = arith.addf %26, %29 : vector<32x128xf32>
    %c0_17 = arith.constant 0 : index
    %c0_18 = arith.constant 0 : index
    %31 = vector.load %arg5[%c0_17, %c0_18] : memref<1x128xf32, #tpu.memory_space<vmem>>, vector<1x128xf32>
    %32 = vector.broadcast %31 : vector<1x128xf32> to vector<32x128xf32>
    %33 = arith.addf %30, %32 : vector<32x128xf32>
    %cst_19 = arith.constant 0.000000e+00 : f32
    %34 = vector.broadcast %cst_19 : f32 to vector<32x128xf32>
    %35 = arith.maximumf %33, %34 : vector<32x128xf32>
    %36 = vector.broadcast %13 : vector<32x1xf32> to vector<32x128xf32>
    %37 = arith.mulf %35, %36 : vector<32x128xf32>
    %38 = vector.extract_strided_slice %37 {offsets = [30, 0], sizes = [2, 128], strides = [1, 1]} : vector<32x128xf32> to vector<2x128xf32>
    %39 = vector.extract_strided_slice %37 {offsets = [0, 0], sizes = [30, 128], strides = [1, 1]} : vector<32x128xf32> to vector<30x128xf32>
    %40 = tpu.concatenate %38, %39 in 0 : vector<2x128xf32>, vector<30x128xf32> -> vector<32x128xf32>
    %c0_20 = arith.constant 0 : index
    %c0_21 = arith.constant 0 : index
    %c0_22 = arith.constant 0 : index
    %41 = vector.load %arg6[%c0_20, %c0_21, %c0_22] : memref<3x128x128xf32, #tpu.memory_space<vmem>>, vector<1x128x128xf32>
    %42 = vector.shape_cast %41 : vector<1x128x128xf32> to vector<128x128xf32>
    %cst_23 = arith.constant dense<0.000000e+00> : vector<32x128xf32>
    %43 = tpu.matmul %40, %42, %cst_23 {dimension_numbers = #tpu.dot_dimension_numbers<[1], [0], [0], [1], [0, 0, 1, 1], [], []>} : vector<32x128xf32>, vector<128x128xf32>, vector<32x128xf32> -> vector<32x128xf32>
    %44 = vector.extract_strided_slice %37 {offsets = [31, 0], sizes = [1, 128], strides = [1, 1]} : vector<32x128xf32> to vector<1x128xf32>
    %45 = vector.extract_strided_slice %37 {offsets = [0, 0], sizes = [31, 128], strides = [1, 1]} : vector<32x128xf32> to vector<31x128xf32>
    %46 = tpu.concatenate %44, %45 in 0 : vector<1x128xf32>, vector<31x128xf32> -> vector<32x128xf32>
    %c1_24 = arith.constant 1 : index
    %c0_25 = arith.constant 0 : index
    %c0_26 = arith.constant 0 : index
    %47 = vector.load %arg6[%c1_24, %c0_25, %c0_26] : memref<3x128x128xf32, #tpu.memory_space<vmem>>, vector<1x128x128xf32>
    %48 = vector.shape_cast %47 : vector<1x128x128xf32> to vector<128x128xf32>
    %cst_27 = arith.constant dense<0.000000e+00> : vector<32x128xf32>
    %49 = tpu.matmul %46, %48, %cst_27 {dimension_numbers = #tpu.dot_dimension_numbers<[1], [0], [0], [1], [0, 0, 1, 1], [], []>} : vector<32x128xf32>, vector<128x128xf32>, vector<32x128xf32> -> vector<32x128xf32>
    %50 = arith.addf %43, %49 : vector<32x128xf32>
    %c2_28 = arith.constant 2 : index
    %c0_29 = arith.constant 0 : index
    %c0_30 = arith.constant 0 : index
    %51 = vector.load %arg6[%c2_28, %c0_29, %c0_30] : memref<3x128x128xf32, #tpu.memory_space<vmem>>, vector<1x128x128xf32>
    %52 = vector.shape_cast %51 : vector<1x128x128xf32> to vector<128x128xf32>
    %cst_31 = arith.constant dense<0.000000e+00> : vector<32x128xf32>
    %53 = tpu.matmul %37, %52, %cst_31 {dimension_numbers = #tpu.dot_dimension_numbers<[1], [0], [0], [1], [0, 0, 1, 1], [], []>} : vector<32x128xf32>, vector<128x128xf32>, vector<32x128xf32> -> vector<32x128xf32>
    %54 = arith.addf %50, %53 : vector<32x128xf32>
    %c0_32 = arith.constant 0 : index
    %c0_33 = arith.constant 0 : index
    %55 = vector.load %arg7[%c0_32, %c0_33] : memref<1x128xf32, #tpu.memory_space<vmem>>, vector<1x128xf32>
    %56 = vector.broadcast %55 : vector<1x128xf32> to vector<32x128xf32>
    %57 = arith.addf %54, %56 : vector<32x128xf32>
    %c0_34 = arith.constant 0 : index
    %c0_35 = arith.constant 0 : index
    %58 = vector.load %arg8[%c0_34, %c0_35] : memref<128x128xf32, #tpu.memory_space<vmem>>, vector<128x128xf32>
    %cst_36 = arith.constant dense<0.000000e+00> : vector<32x128xf32>
    %59 = tpu.matmul %5, %58, %cst_36 {dimension_numbers = #tpu.dot_dimension_numbers<[1], [0], [0], [1], [0, 0, 1, 1], [], []>} : vector<32x128xf32>, vector<128x128xf32>, vector<32x128xf32> -> vector<32x128xf32>
    %c0_37 = arith.constant 0 : index
    %c0_38 = arith.constant 0 : index
    %60 = vector.load %arg9[%c0_37, %c0_38] : memref<1x128xf32, #tpu.memory_space<vmem>>, vector<1x128xf32>
    %61 = vector.broadcast %60 : vector<1x128xf32> to vector<32x128xf32>
    %62 = arith.addf %59, %61 : vector<32x128xf32>
    %63 = arith.addf %57, %62 : vector<32x128xf32>
    %cst_39 = arith.constant 0.000000e+00 : f32
    %64 = vector.broadcast %cst_39 : f32 to vector<32x128xf32>
    %65 = arith.maximumf %63, %64 : vector<32x128xf32>
    %66 = vector.broadcast %13 : vector<32x1xf32> to vector<32x128xf32>
    %67 = arith.mulf %65, %66 : vector<32x128xf32>
    %68 = vector.extract_strided_slice %67 {offsets = [28, 0], sizes = [4, 128], strides = [1, 1]} : vector<32x128xf32> to vector<4x128xf32>
    %69 = vector.extract_strided_slice %67 {offsets = [0, 0], sizes = [28, 128], strides = [1, 1]} : vector<32x128xf32> to vector<28x128xf32>
    %70 = tpu.concatenate %68, %69 in 0 : vector<4x128xf32>, vector<28x128xf32> -> vector<32x128xf32>
    %c0_40 = arith.constant 0 : index
    %c0_41 = arith.constant 0 : index
    %c0_42 = arith.constant 0 : index
    %71 = vector.load %arg10[%c0_40, %c0_41, %c0_42] : memref<3x128x128xf32, #tpu.memory_space<vmem>>, vector<1x128x128xf32>
    %72 = vector.shape_cast %71 : vector<1x128x128xf32> to vector<128x128xf32>
    %cst_43 = arith.constant dense<0.000000e+00> : vector<32x128xf32>
    %73 = tpu.matmul %70, %72, %cst_43 {dimension_numbers = #tpu.dot_dimension_numbers<[1], [0], [0], [1], [0, 0, 1, 1], [], []>} : vector<32x128xf32>, vector<128x128xf32>, vector<32x128xf32> -> vector<32x128xf32>
    %74 = vector.extract_strided_slice %67 {offsets = [30, 0], sizes = [2, 128], strides = [1, 1]} : vector<32x128xf32> to vector<2x128xf32>
    %75 = vector.extract_strided_slice %67 {offsets = [0, 0], sizes = [30, 128], strides = [1, 1]} : vector<32x128xf32> to vector<30x128xf32>
    %76 = tpu.concatenate %74, %75 in 0 : vector<2x128xf32>, vector<30x128xf32> -> vector<32x128xf32>
    %c1_44 = arith.constant 1 : index
    %c0_45 = arith.constant 0 : index
    %c0_46 = arith.constant 0 : index
    %77 = vector.load %arg10[%c1_44, %c0_45, %c0_46] : memref<3x128x128xf32, #tpu.memory_space<vmem>>, vector<1x128x128xf32>
    %78 = vector.shape_cast %77 : vector<1x128x128xf32> to vector<128x128xf32>
    %cst_47 = arith.constant dense<0.000000e+00> : vector<32x128xf32>
    %79 = tpu.matmul %76, %78, %cst_47 {dimension_numbers = #tpu.dot_dimension_numbers<[1], [0], [0], [1], [0, 0, 1, 1], [], []>} : vector<32x128xf32>, vector<128x128xf32>, vector<32x128xf32> -> vector<32x128xf32>
    %80 = arith.addf %73, %79 : vector<32x128xf32>
    %c2_48 = arith.constant 2 : index
    %c0_49 = arith.constant 0 : index
    %c0_50 = arith.constant 0 : index
    %81 = vector.load %arg10[%c2_48, %c0_49, %c0_50] : memref<3x128x128xf32, #tpu.memory_space<vmem>>, vector<1x128x128xf32>
    %82 = vector.shape_cast %81 : vector<1x128x128xf32> to vector<128x128xf32>
    %cst_51 = arith.constant dense<0.000000e+00> : vector<32x128xf32>
    %83 = tpu.matmul %67, %82, %cst_51 {dimension_numbers = #tpu.dot_dimension_numbers<[1], [0], [0], [1], [0, 0, 1, 1], [], []>} : vector<32x128xf32>, vector<128x128xf32>, vector<32x128xf32> -> vector<32x128xf32>
    %84 = arith.addf %80, %83 : vector<32x128xf32>
    %c0_52 = arith.constant 0 : index
    %c0_53 = arith.constant 0 : index
    %85 = vector.load %arg11[%c0_52, %c0_53] : memref<1x128xf32, #tpu.memory_space<vmem>>, vector<1x128xf32>
    %86 = vector.broadcast %85 : vector<1x128xf32> to vector<32x128xf32>
    %87 = arith.addf %84, %86 : vector<32x128xf32>
    %cst_54 = arith.constant 0.000000e+00 : f32
    %88 = vector.broadcast %cst_54 : f32 to vector<32x128xf32>
    %89 = arith.maximumf %87, %88 : vector<32x128xf32>
    %90 = vector.broadcast %13 : vector<32x1xf32> to vector<32x128xf32>
    %91 = arith.mulf %89, %90 : vector<32x128xf32>
    %92 = vector.extract_strided_slice %91 {offsets = [28, 0], sizes = [4, 128], strides = [1, 1]} : vector<32x128xf32> to vector<4x128xf32>
    %93 = vector.extract_strided_slice %91 {offsets = [0, 0], sizes = [28, 128], strides = [1, 1]} : vector<32x128xf32> to vector<28x128xf32>
    %94 = tpu.concatenate %92, %93 in 0 : vector<4x128xf32>, vector<28x128xf32> -> vector<32x128xf32>
    %c0_55 = arith.constant 0 : index
    %c0_56 = arith.constant 0 : index
    %c0_57 = arith.constant 0 : index
    %95 = vector.load %arg12[%c0_55, %c0_56, %c0_57] : memref<3x128x128xf32, #tpu.memory_space<vmem>>, vector<1x128x128xf32>
    %96 = vector.shape_cast %95 : vector<1x128x128xf32> to vector<128x128xf32>
    %cst_58 = arith.constant dense<0.000000e+00> : vector<32x128xf32>
    %97 = tpu.matmul %94, %96, %cst_58 {dimension_numbers = #tpu.dot_dimension_numbers<[1], [0], [0], [1], [0, 0, 1, 1], [], []>} : vector<32x128xf32>, vector<128x128xf32>, vector<32x128xf32> -> vector<32x128xf32>
    %98 = vector.extract_strided_slice %91 {offsets = [30, 0], sizes = [2, 128], strides = [1, 1]} : vector<32x128xf32> to vector<2x128xf32>
    %99 = vector.extract_strided_slice %91 {offsets = [0, 0], sizes = [30, 128], strides = [1, 1]} : vector<32x128xf32> to vector<30x128xf32>
    %100 = tpu.concatenate %98, %99 in 0 : vector<2x128xf32>, vector<30x128xf32> -> vector<32x128xf32>
    %c1_59 = arith.constant 1 : index
    %c0_60 = arith.constant 0 : index
    %c0_61 = arith.constant 0 : index
    %101 = vector.load %arg12[%c1_59, %c0_60, %c0_61] : memref<3x128x128xf32, #tpu.memory_space<vmem>>, vector<1x128x128xf32>
    %102 = vector.shape_cast %101 : vector<1x128x128xf32> to vector<128x128xf32>
    %cst_62 = arith.constant dense<0.000000e+00> : vector<32x128xf32>
    %103 = tpu.matmul %100, %102, %cst_62 {dimension_numbers = #tpu.dot_dimension_numbers<[1], [0], [0], [1], [0, 0, 1, 1], [], []>} : vector<32x128xf32>, vector<128x128xf32>, vector<32x128xf32> -> vector<32x128xf32>
    %104 = arith.addf %97, %103 : vector<32x128xf32>
    %c2_63 = arith.constant 2 : index
    %c0_64 = arith.constant 0 : index
    %c0_65 = arith.constant 0 : index
    %105 = vector.load %arg12[%c2_63, %c0_64, %c0_65] : memref<3x128x128xf32, #tpu.memory_space<vmem>>, vector<1x128x128xf32>
    %106 = vector.shape_cast %105 : vector<1x128x128xf32> to vector<128x128xf32>
    %cst_66 = arith.constant dense<0.000000e+00> : vector<32x128xf32>
    %107 = tpu.matmul %91, %106, %cst_66 {dimension_numbers = #tpu.dot_dimension_numbers<[1], [0], [0], [1], [0, 0, 1, 1], [], []>} : vector<32x128xf32>, vector<128x128xf32>, vector<32x128xf32> -> vector<32x128xf32>
    %108 = arith.addf %104, %107 : vector<32x128xf32>
    %c0_67 = arith.constant 0 : index
    %c0_68 = arith.constant 0 : index
    %109 = vector.load %arg13[%c0_67, %c0_68] : memref<1x128xf32, #tpu.memory_space<vmem>>, vector<1x128xf32>
    %110 = vector.broadcast %109 : vector<1x128xf32> to vector<32x128xf32>
    %111 = arith.addf %108, %110 : vector<32x128xf32>
    %c0_69 = arith.constant 0 : index
    %c0_70 = arith.constant 0 : index
    %112 = vector.load %arg14[%c0_69, %c0_70] : memref<128x128xf32, #tpu.memory_space<vmem>>, vector<128x128xf32>
    %cst_71 = arith.constant dense<0.000000e+00> : vector<32x128xf32>
    %113 = tpu.matmul %67, %112, %cst_71 {dimension_numbers = #tpu.dot_dimension_numbers<[1], [0], [0], [1], [0, 0, 1, 1], [], []>} : vector<32x128xf32>, vector<128x128xf32>, vector<32x128xf32> -> vector<32x128xf32>
    %c0_72 = arith.constant 0 : index
    %c0_73 = arith.constant 0 : index
    %114 = vector.load %arg15[%c0_72, %c0_73] : memref<1x128xf32, #tpu.memory_space<vmem>>, vector<1x128xf32>
    %115 = vector.broadcast %114 : vector<1x128xf32> to vector<32x128xf32>
    %116 = arith.addf %113, %115 : vector<32x128xf32>
    %117 = arith.addf %111, %116 : vector<32x128xf32>
    %cst_74 = arith.constant 0.000000e+00 : f32
    %118 = vector.broadcast %cst_74 : f32 to vector<32x128xf32>
    %119 = arith.maximumf %117, %118 : vector<32x128xf32>
    %120 = vector.extract_strided_slice %119 {offsets = [16, 0], sizes = [16, 128], strides = [1, 1]} : vector<32x128xf32> to vector<16x128xf32>
    %c0_75 = arith.constant 0 : index
    %c0_76 = arith.constant 0 : index
    %c0_77 = arith.constant 0 : index
    %121 = vector.load %arg16[%c0_75, %c0_76, %c0_77] : memref<1x16x128xf32, #tpu.memory_space<vmem>>, vector<1x16x128xf32>
    %122 = vector.shape_cast %121 : vector<1x16x128xf32> to vector<16x128xf32>
    %123 = vector.shape_cast %120 : vector<16x128xf32> to vector<1x16x128xf32>
    tpu.vector_store %arg16[%c0_75, %c0_76, %c0_77], %123 {strides = array<i32>} : memref<1x16x128xf32, #tpu.memory_space<vmem>>, vector<1x16x128xf32>,
    return
  }
  func.func @transform_0(%arg0: i32, %arg1: i32) -> (i32, i32, i32) {
    %c0_i32 = arith.constant 0 : i32
    %c0_i32_0 = arith.constant 0 : i32
    return %arg0, %arg1, %c0_i32 : i32, i32, i32
  }
  func.func @transform_1(%arg0: i32, %arg1: i32) -> (i32, i32, i32, i32) {
    %c0_i32 = arith.constant 0 : i32
    %c0_i32_0 = arith.constant 0 : i32
    %c0_i32_1 = arith.constant 0 : i32
    return %arg0, %arg1, %c0_i32, %c0_i32_0 : i32, i32, i32, i32
  }
  func.func @transform_2(%arg0: i32, %arg1: i32) -> (i32, i32, i32) {
    %c0_i32 = arith.constant 0 : i32
    %c0_i32_0 = arith.constant 0 : i32
    %c0_i32_1 = arith.constant 0 : i32
    %c0_i32_2 = arith.constant 0 : i32
    return %c0_i32, %c0_i32_0, %c0_i32_1 : i32, i32, i32
  }
  func.func @transform_3(%arg0: i32, %arg1: i32) -> (i32, i32) {
    %c0_i32 = arith.constant 0 : i32
    %c0_i32_0 = arith.constant 0 : i32
    %c0_i32_1 = arith.constant 0 : i32
    return %c0_i32, %c0_i32_0 : i32, i32
  }
  func.func @transform_4(%arg0: i32, %arg1: i32) -> (i32, i32, i32) {
    %c0_i32 = arith.constant 0 : i32
    %c0_i32_0 = arith.constant 0 : i32
    %c0_i32_1 = arith.constant 0 : i32
    %c0_i32_2 = arith.constant 0 : i32
    return %c0_i32, %c0_i32_0, %c0_i32_1 : i32, i32, i32
  }
  func.func @transform_5(%arg0: i32, %arg1: i32) -> (i32, i32) {
    %c0_i32 = arith.constant 0 : i32
    %c0_i32_0 = arith.constant 0 : i32
    %c0_i32_1 = arith.constant 0 : i32
    return %c0_i32, %c0_i32_0 : i32, i32
  }
  func.func @transform_6(%arg0: i32, %arg1: i32) -> (i32, i32) {
    %c0_i32 = arith.constant 0 : i32
    %c0_i32_0 = arith.constant 0 : i32
    %c0_i32_1 = arith.constant 0 : i32
    return %c0_i32, %c0_i32_0 : i32, i32
  }
  func.func @transform_7(%arg0: i32, %arg1: i32) -> (i32, i32) {
    %c0_i32 = arith.constant 0 : i32
    %c0_i32_0 = arith.constant 0 : i32
    %c0_i32_1 = arith.constant 0 : i32
    return %c0_i32, %c0_i32_0 : i32, i32
  }
  func.func @transform_8(%arg0: i32, %arg1: i32) -> (i32, i32, i32) {
    %c0_i32 = arith.constant 0 : i32
    %c0_i32_0 = arith.constant 0 : i32
    %c0_i32_1 = arith.constant 0 : i32
    %c0_i32_2 = arith.constant 0 : i32
    return %c0_i32, %c0_i32_0, %c0_i32_1 : i32, i32, i32
  }
  func.func @transform_9(%arg0: i32, %arg1: i32) -> (i32, i32) {
    %c0_i32 = arith.constant 0 : i32
    %c0_i32_0 = arith.constant 0 : i32
    %c0_i32_1 = arith.constant 0 : i32
    return %c0_i32, %c0_i32_0 : i32, i32
  }
  func.func @transform_10(%arg0: i32, %arg1: i32) -> (i32, i32, i32) {
    %c0_i32 = arith.constant 0 : i32
    %c0_i32_0 = arith.constant 0 : i32
    %c0_i32_1 = arith.constant 0 : i32
    %c0_i32_2 = arith.constant 0 : i32
    return %c0_i32, %c0_i32_0, %c0_i32_1 : i32, i32, i32
  }
  func.func @transform_11(%arg0: i32, %arg1: i32) -> (i32, i32) {
    %c0_i32 = arith.constant 0 : i32
    %c0_i32_0 = arith.constant 0 : i32
    %c0_i32_1 = arith.constant 0 : i32
    return %c0_i32, %c0_i32_0 : i32, i32
  }
  func.func @transform_12(%arg0: i32, %arg1: i32) -> (i32, i32) {
    %c0_i32 = arith.constant 0 : i32
    %c0_i32_0 = arith.constant 0 : i32
    %c0_i32_1 = arith.constant 0 : i32
    return %c0_i32, %c0_i32_0 : i32, i32
  }
  func.func @transform_13(%arg0: i32, %arg1: i32) -> (i32, i32) {
    %c0_i32 = arith.constant 0 : i32
    %c0_i32_0 = arith.constant 0 : i32
    %c0_i32_1 = arith.constant 0 : i32
    return %c0_i32, %c0_i32_0 : i32, i32
  }
  func.func @transform_14(%arg0: i32, %arg1: i32) -> (i32, i32, i32) {
    %c0_i32 = arith.constant 0 : i32
    %c0_i32_0 = arith.constant 0 : i32
    return %arg0, %arg1, %c0_i32 : i32, i32, i32
  }
}

</mosaic_0001>

<bundles_post_ra>
// kernel: tcn_encoder.1
= control target key start
LH: loop header
LB: loop body
LE: loop exit
PB: predicated region body
PF: predicated region fallthrough
CT: control target
= control target key end

     0   :  { %s4080_s0 = inlined_call_operand.vmem [shape: f32[2,16,128], index: 0, kind: input, shape index: {}]   ;;  %s4081_s1 = inlined_call_operand.vmem [shape: f32[2,1,16,128], index: 1, kind: input, shape index: {}]   ;;  %s4082_s2 = inlined_call_operand.hbm [shape: f32[3,128,128], index: 2, kind: input, shape index: {}]   ;;  %s4083_s3 = inlined_call_operand.vmem [shape: f32[1,128], index: 3, kind: input, shape index: {}]   ;;  %s4084_s4 = inlined_call_operand.hbm [shape: f32[3,128,128], index: 4, kind: input, shape index: {}]   ;;  %s4085_s5 = inlined_call_operand.vmem [shape: f32[1,128], index: 5, kind: input, shape index: {}]   ;;  %s4086_s6 = inlined_call_operand.vmem [shape: f32[128,128], index: 6, kind: input, shape index: {}]   ;;  %s4087_s7 = inlined_call_operand.vmem [shape: f32[1,128], index: 7, kind: input, shape index: {}]   ;;  %s4088_s8 = inlined_call_operand.hbm [shape: f32[3,128,128], index: 8, kind: input, shape index: {}]   ;;  %s4089_s9 = inlined_call_operand.vmem [shape: f32[1,128], index: 9, kind: input, shape index: {}]   ;;  %s4090_s10 = inlined_call_operand.hbm [shape: f32[3,128,128], index: 10, kind: input, shape index: {}]   ;;  %s4091_s11 = inlined_call_operand.vmem [shape: f32[1,128], index: 11, kind: input, shape index: {}]   ;;  %s4092_s12 = inlined_call_operand.hbm [shape: f32[128,128], index: 12, kind: input, shape index: {}]   ;;  %s4093_s13 = inlined_call_operand.vmem [shape: f32[1,128], index: 13, kind: input, shape index: {}]   ;;  %s4094_s14 = inlined_call_operand.hbm [shape: f32[2,16,128], index: 14, kind: output, shape index: {}]  }
   0x1   :  { %4103 = sst [smem:[#allocation23_spill]] %s4084_s4 }
   0x2   :  { %4104 = sst [smem:[#allocation24_spill]] %s4094_s14 }
   0x3   :  { %19 = vsyncpa [#allocation3], 0 }
   0x4   :  { %20 = vsyncpa [#allocation6], 0 }
   0x5   :  { %21 = vsyncpa [#allocation9], 0 }
   0x6   :  { %22 = vsyncpa [#allocation4], 0 }
   0x7   :  { %24 = vsyncpa [#allocation4 + $0x1], 0  ;;  %s3697_s29 = smov 0   ;;  %s3699_s30 = smov 0  }
   0x8   :  { %s3701_s15 = smov 0   ;;  %s3703_s16 = smov 0  }
   0x9   :  { %s3705_s17 = smov 0   ;;  %s3707_s18 = smov 0  }
   0xa LB: > { %4105 = sst [smem:[#allocation16_spill]] %s3590_s29  ;;  %s2436_s19 = sadd.s32 4294967295, %s3610_s18   ;;  %s3610_s18 = sphi %s3707_s18, %s30_s18   ;;  %s3606_s17 = sphi %s3705_s17, %s4130_s17   ;;  %s3602_s16 = sphi %s3703_s16, %s4126_s16   ;;  %s3598_s15 = sphi %s3701_s15, %s4125_s15   ;;  %s3594_s30 = sphi %s3699_s30, %s4129_s30   ;;  %s3590_s29 = sphi %s3697_s29, %s4128_s29  }
   0xb   : > { %4106 = sst [smem:[#allocation17_spill]] %s3598_s15  ;;  %s2437_s20 = sadd.s32 4294967294, %s3610_s18  }
   0xc   : > { %4107 = sst [smem:[#allocation18_spill]] %s3606_s17  ;;  %s42_s21 = sadd.s32 1, %s3606_s17 }
   0xd   : > { %4108 = sst [smem:[#allocation19_spill]] %s3610_s18  ;;  %s359_s22 = sadd.s32 1, %s3598_s15 }
   0xe   : > { %p44_p0 = scmp.ge.s32.totalorder %s42_s21, 2  ;;  %p369_p1 = scmp.ne.s32.totalorder %s3598_s15, %s3594_s30 }
   0xf   : > { %p370_p2 = scmp.eq.s32.totalorder %s2436_s19, 1  ;;  %p375_p3 = scmp.ne.s32.totalorder %s3594_s30, %s3590_s29 }
  0x10   : > { %s4132_s21 = smov (%p44_p0, %s42_s21), 0  ;;  %p376_p5 = scmp.eq.s32.totalorder %s2437_s20, 1 }
  0x11   : > { %4109 = sst [smem:[#allocation20_spill]] %s4132_s21  ;;  %p3737_p4 = por %p370_p2, %p369_p1 }
  0x12   : > { %s354_s24 = ssub.s32 %s3606_s17, %s4132_s21  ;;  %p2438_p6 = scmp.ge.s32.totalorder %s3610_s18, 1 }
  0x13   : > { %p357_p7 = scmp.eq.s32.totalorder %s354_s24, 0  ;;  %p3744_p8 = por %p376_p5, %p375_p3 }
  0x14   : > { %p383_p9 = scmp.lt.s32.totalorder %s3610_s18, 3  ;;  %p3756_p11 = scmp.eq.s32.totalorder %s2436_s19, 0 }
  0x15   : > { %s4111_s25 = scalar_select %p3744_p8, 1, 0 }
  0x16   : > { %s3750_s26 = scalar_select %p357_p7, %s3598_s15, %s359_s22  }
  0x17   : > { %4112 = sst [smem:[#allocation21_spill]] %s4111_s25  ;;  %p3752_p10 = pnand %p2438_p6, %p383_p9 }
  0x18   : > { %4113 = sst [smem:[#allocation22_spill]] %s3750_s26  ;;  %s3612_s20 = smov [#allocation5]  }
  0x19   : > { %p3304_p12 = pneg %p3752_p10  ;;  %s411_s24 = sshll.u32 %s3612_s20, 4  ;;  %s412_s24 = int_to_ptr.vmem [resolvable:$true] %s411_s24 }
  0x1a   : > { %s3613_s22 = smov [#allocation8]   ;;  %s3403_s26 = scalar_lea.vmem %s412_s24, 6144 }
  0x1b   : > { %p3764_p13 = pnand %p3756_p11, %p3304_p12  ;;  %s449_s17 = sshll.u32 %s3613_s22, 4  ;;  %s450_s17 = int_to_ptr.vmem [resolvable:$true] %s449_s17 }
  0x1c   : > { %p3404_p1 = scmp.ne.s32.totalorder %s412_s24, %s3403_s26  ;;  %p3411_p5 = scmp.lt.s32.totalorder %s412_s24, %s412_s24 }
  0x1d   : > { %p3770_p0 = pneg %p3764_p13  ;;  %p3412_p6 = scmp.lt.s32.totalorder %s3403_s26, %s3403_s26 }
  0x1f   : > { %p3406_p2 = pnand %p3404_p1, %p3770_p0  ;;  %p3413_p7 = por %p3412_p6, %p3411_p5 }
  0x21   : > { %p3407_p3 = pneg %p3406_p2 }
  0x23   : > { %p3414_p9 = pnand %p3413_p7, %p3407_p3 }
  0x25   : > { %3417 = shalt.err (!%p3414_p9)
}
  0x26   : > { %s3614_s20 = smov 128   ;;  %s3615_s22 = smov 8  }
  0x27   : > { %s4118_s4 = sld [smem:[#allocation23_spill]]  ;;  %s3429_s29 = scalar_lea.vmem %s450_s17, 6144 }
  0x28   : > { %p3430_p12 = scmp.ne.s32.totalorder %s450_s17, %s3429_s29  ;;  %p3437_p5 = scmp.lt.s32.totalorder %s450_s17, %s450_s17 }
  0x29   : > { %p3438_p3 = scmp.lt.s32.totalorder %s3429_s29, %s3429_s29 }
  0x2a   : > { %p3432_p1 = pnand %p3430_p12, %p3770_p0 }
  0x2b   : > { %p3439_p6 = por %p3438_p3, %p3437_p5 }
  0x2c   : > { %p3433_p2 = pneg %p3432_p1 }
  0x2d   : > { %3310 = dma.hbm_to_vmem [thread:$0]  (!%p3764_p13), %s4118_s4, 6144, %s412_s24, [#allocation6], %s3614_s20, %s3614_s20, %s3615_s22  }
  0x2e   : > { %p3440_p7 = pnand %p3439_p6, %p3433_p2 }
  0x30   : > { %3443 = shalt.err (!%p3440_p7)
}
  0x31   : > { %3316 = dma.hbm_to_vmem [thread:$0]  (!%p3764_p13), %s4090_s10, 6144, %s450_s17, [#allocation9], %s3614_s20, %s3614_s20, %s3615_s22  }
  0x32   : > { %s3616_s15 = smov [#allocation2]   ;;  %s3617_s24 = smov [#allocation7]  }
  0x33   : > { %s395_s25 = sshll.u32 %s3616_s15, 4  ;;  %s433_s4 = sshll.u32 %s3617_s24, 4  ;;  %s396_s25 = int_to_ptr.vmem [resolvable:$true] %s395_s25  ;;  %s434_s4 = int_to_ptr.vmem [resolvable:$true] %s433_s4 }
  0x34   : > { %s3455_s14 = scalar_lea.vmem %s396_s25, 6144  ;;  %p3463_p2 = scmp.lt.s32.totalorder %s396_s25, %s396_s25 }
  0x35   : > { %p3456_p9 = scmp.ne.s32.totalorder %s396_s25, %s3455_s14  ;;  %p3464_p5 = scmp.lt.s32.totalorder %s3455_s14, %s3455_s14 }
  0x37   : > { %p3458_p12 = pnand %p3456_p9, %p3770_p0  ;;  %p3465_p3 = por %p3464_p5, %p3463_p2 }
  0x39   : > { %p3459_p1 = pneg %p3458_p12 }
  0x3b   : > { %p3466_p6 = pnand %p3465_p3, %p3459_p1 }
  0x3d   : > { %3469 = shalt.err (!%p3466_p6)
}
  0x3e   : > { %3307 = dma.hbm_to_vmem [thread:$0]  (!%p3764_p13), %s4082_s2, 6144, %s396_s25, [#allocation3], %s3614_s20, %s3614_s20, %s3615_s22  }
  0x3f   : > { %s3481_s18 = scalar_lea.vmem %s434_s4, 6144  ;;  %p3489_p8 = scmp.lt.s32.totalorder %s434_s4, %s434_s4 }
  0x40   : > { %p3482_p7 = scmp.ne.s32.totalorder %s434_s4, %s3481_s18  ;;  %p3490_p2 = scmp.lt.s32.totalorder %s3481_s18, %s3481_s18 }
  0x42   : > { %p3484_p9 = pnand %p3482_p7, %p3770_p0  ;;  %p3491_p1 = por %p3490_p2, %p3489_p8 }
  0x44   : > { %p3485_p12 = pneg %p3484_p9 }
  0x46   : > { %p3492_p5 = pnand %p3491_p1, %p3485_p12 }
  0x48   : > { %3495 = shalt.err (!%p3492_p5)
}
  0x49   : > { %3313 = dma.hbm_to_vmem [thread:$0]  (!%p3764_p13), %s4088_s8, 6144, %s434_s4, [#allocation6], %s3614_s20, %s3614_s20, %s3615_s22  }
  0x4a   : > { %s3618_s15 = smov [#allocation10]  }
  0x4b   : > { %s465_s25 = sshll.u32 %s3618_s15, 4  ;;  %s466_s25 = int_to_ptr.vmem [resolvable:$true] %s465_s25 }
  0x4c   : > { %s3507_s24 = scalar_lea.vmem %s466_s25, 2048  ;;  %p3515_p7 = scmp.lt.s32.totalorder %s466_s25, %s466_s25 }
  0x4d   : > { %p3508_p3 = scmp.ne.s32.totalorder %s466_s25, %s3507_s24  ;;  %p3516_p9 = scmp.lt.s32.totalorder %s3507_s24, %s3507_s24 }
  0x4f   : > { %p3510_p6 = pnand %p3508_p3, %p3770_p0  ;;  %p3517_p12 = por %p3516_p9, %p3515_p7 }
  0x51   : > { %p3511_p8 = pneg %p3510_p6 }
  0x53   : > { %p3518_p2 = pnand %p3517_p12, %p3511_p8 }
  0x55   : > { %3521 = shalt.err (!%p3518_p2)
}
  0x56   : > { %3319 = dma.hbm_to_vmem [thread:$0]  (!%p3764_p13), %s4092_s12, 2048, %s466_s25, [#allocation9], %s3614_s20, %s3614_s20, %s3615_s22  }
  0x57   : > { %509 = sbr.rel (%p3752_p10) target bundleno = 1112 (0x458), region = 76 }
  0x5c   : > { %3573 = dma.done.wait (%p3756_p11), [#allocation3], 6144  }
  0x5d   : > { %3575 = vsyncadd (%p3756_p11), [#allocation3], 4294961152 }
  0x5e   : > { %3577 = dma.done.wait (%p3756_p11), [#allocation6], 12288  }
  0x5f   : > { %3579 = vsyncadd (%p3756_p11), [#allocation6], 4294955008 }
  0x60   : > { %3581 = dma.done.wait (%p3756_p11), [#allocation9], 8192  }
  0x61   : > { %3583 = vsyncadd (%p3756_p11), [#allocation9], 4294959104  ;;  %v693_v0 = vld [vmem:[#allocation2 + $0xf8] sm:$0xff]  ;;  %v692_v2 = vld [vmem:[#allocation2 + $0xf0] sm:$0xff]  ;;  %p585_p10 = scmp.lt.s32.totalorder %s3602_s16, 1  ;;  %vm665_vm0 = vcmask 1040384  }
  0x62   : > { %v662_v1 = vld [vmem:[#allocation2 + $0x78] sm:$0xff]  ;;  %2750 = vmatprep.subr.mxu0 %v693_v0  ;;  %v661_v3 = vld [vmem:[#allocation2 + $0x70] sm:$0xff]  ;;  %v691_v4 = vld [vmem:[#allocation2 + $0xe8] sm:$0xff]  ;;  %vm635_vm1 = vcmask 1041408   ;;  %vm1465_vm2 = vcmask 1043456   ;;  %s581_s19 = sand.u32 1, %s3594_s30  }
  0x63   : > { %2788 = vmatprep.subr.mxu1 %v662_v1  ;;  %2751 = vmatpush3.msra.mxu0 %v693_v0  ;;  %v660_v5 = vld [vmem:[#allocation2 + $0x68] sm:$0xff]  ;;  %v690_v6 = vld [vmem:[#allocation2 + $0xe0] sm:$0xff]  ;;  %v689_v8 = vld [vmem:[#allocation2 + $0xd8] sm:$0xff]  ;;  %s586_s21 = scalar_select %p585_p10, %s3602_s16, 1 }
  0x64   : > { %2789 = vmatpush3.msra.mxu1 %v662_v1  ;;  %2752 = vmatprep.subr.mxu0 %v692_v2  ;;  %v659_v7 = vld [vmem:[#allocation2 + $0x60] sm:$0xff]  ;;  %v658_v9 = vld [vmem:[#allocation2 + $0x58] sm:$0xff]  ;;  %v688_v10 = vld [vmem:[#allocation2 + $0xd0] sm:$0xff]  ;;  %s2469_s25 = sshll.u32 %s3602_s16, 8  ;;  %s4119_s4 = sld [smem:[#allocation24_spill]] }
  0x65   : > { %2790 = vmatprep.subr.mxu1 %v661_v3  ;;  %2753 = vmatpush3.msra.mxu0 %v692_v2  ;;  %v657_v11 = vld [vmem:[#allocation2 + $0x50] sm:$0xff]  ;;  %v687_v12 = vld [vmem:[#allocation2 + $0xc8] sm:$0xff]  ;;  %v686_v14 = vld [vmem:[#allocation2 + $0xc0] sm:$0xff]  ;;  %s2467_s27 = sshll.u32 %s586_s21, 4  ;;  %s3619_s16 = smov [#allocation11]  }
  0x66   : > { %2791 = vmatpush3.msra.mxu1 %v661_v3  ;;  %2754 = vmatprep.subr.mxu0 %v691_v4  ;;  %v656_v13 = vld [vmem:[#allocation2 + $0x48] sm:$0xff]  ;;  %v655_v15 = vld [vmem:[#allocation2 + $0x40] sm:$0xff]  ;;  %v685_v16 = vld [vmem:[#allocation2 + $0xb8] sm:$0xff]  ;;  %s592_s20 = scalar_lea.vmem %s4080_s0, %s2467_s27  ;;  %s602_s18 = scalar_lea.vmem %s4081_s1, %s2467_s27 }
  0x67   : > { %2792 = vmatprep.subr.mxu1 %v660_v5  ;;  %2755 = vmatpush3.msra.mxu0 %v691_v4  ;;  %v654_v17 = vld [vmem:[#allocation2 + $0x38] sm:$0xff]  ;;  %v684_v18 = vld [vmem:[#allocation2 + $0xb0] sm:$0xff]  ;;  %v683_v20 = vld [vmem:[#allocation2 + $0xa8] sm:$0xff]  ;;  %s4035_s27 = scalar_lea.sflag [#allocation4], %s581_s19 }
  0x68   : > { %2793 = vmatpush3.msra.mxu1 %v660_v5  ;;  %2756 = vmatprep.subr.mxu0 %v690_v6  ;;  %v653_v19 = vld [vmem:[#allocation2 + $0x30] sm:$0xff]  ;;  %v652_v21 = vld [vmem:[#allocation2 + $0x28] sm:$0xff]  ;;  %v682_v22 = vld [vmem:[#allocation2 + $0xa0] sm:$0xff] }
  0x69   : > { %2794 = vmatprep.subr.mxu1 %v659_v7  ;;  %2757 = vmatpush3.msra.mxu0 %v690_v6  ;;  %v651_v23 = vld [vmem:[#allocation2 + $0x20] sm:$0xff]  ;;  %v681_v24 = vld [vmem:[#allocation2 + $0x98] sm:$0xff]  ;;  %v3846_v26 = vld [vmem:[%s592_s20 + $0x8] sm:$0xff] }
  0x6a   : > { %2795 = vmatpush3.msra.mxu1 %v659_v7  ;;  %2758 = vmatprep.subr.mxu0 %v689_v8  ;;  %v650_v25 = vld [vmem:[#allocation2 + $0x18] sm:$0xff]  ;;  %v3848_v27 = vld [vmem:[%s602_s18] sm:$0xff]  ;;  %v680_v28 = vld [vmem:[#allocation2 + $0x90] sm:$0xff]  ;;  %v663_v31 = vrot.slane %v3846_v26, 7  ;;  %v630_v36 = vrot.slane %v3846_v26, 6  ;;  %s4033_s21 = scalar_lea.hbm %s4119_s4, %s2469_s25 }
  0x6b   : > { %2796 = vmatprep.subr.mxu1 %v658_v9  ;;  %2759 = vmatpush3.msra.mxu0 %v689_v8  ;;  %v649_v29 = vld [vmem:[#allocation2 + $0x10] sm:$0xff]  ;;  %v3850_v30 = vld [vmem:[%s602_s18 + $0x8] sm:$0xff]  ;;  %v666_v32 = vrot.slane %v3848_v27, 7  ;;  %v3854_v33 = vld [vmem:[%s592_s20] sm:$0xff]  ;;  %v636_v37 = vrot.slane %v3848_v27, 6  ;;  %s2451_s20 = sshll.u32 %s581_s19, 4 }
  0x6c   : > { %2797 = vmatpush3.msra.mxu1 %v658_v9  ;;  %2760 = vmatprep.subr.mxu0 %v688_v10  ;;  %v679_v34 = vld [vmem:[#allocation2 + $0x88] sm:$0xff]  ;;  %v667_v38 = vrot.slane %v3850_v30, 7  ;;  %v637_v39 = vrot.slane %v3850_v30, 6  ;;  %v678_v40 = vld [vmem:[#allocation2 + $0x80] sm:$0xff]  ;;  %v669_v42 = vrot.slane %v3854_v33, 7  ;;  %v639_v44 = vrot.slane %v3854_v33, 6 }
  0x6d   : > { %2798 = vmatprep.subr.mxu1 %v657_v11  ;;  %2761 = vmatpush3.msra.mxu0 %v688_v10  ;;  %v648_v35 = vld [vmem:[#allocation2 + $0x8] sm:$0xff]  ;;  %v647_v41 = vld [vmem:[#allocation2] sm:$0xff]  ;;  %v676_v43 = vsel %vm665_vm0, %v663_v31, %v666_v32  ;;  %v646_v45 = vsel %vm635_vm1, %v630_v36, %v636_v37  ;;  %v880_v48 = vld [vmem:[#allocation2 + $0x178] sm:$0xff]  ;;  %s583_s26 = scalar_lea.vmem [#allocation11], %s2451_s20  ;;  %s3526_s20 = sshll.u32 %s3619_s16, 4  ;;  %s3527_s20 = int_to_ptr.vmem [resolvable:$false] %s3526_s20 }
  0x6e   : > { %2799 = vmatpush3.msra.mxu1 %v657_v11  ;;  %2762 = vmatprep.subr.mxu0 %v687_v12  ;;  %v668_v46 = vsel %vm665_vm0, %v666_v32, %v667_v38  ;;  %v638_v47 = vsel %vm635_vm1, %v636_v37, %v637_v39  ;;  %v670_v49 = vsel %vm665_vm0, %v667_v38, %v669_v42  ;;  %v879_v51 = vld [vmem:[#allocation2 + $0x170] sm:$0xff]  ;;  %v878_v53 = vld [vmem:[#allocation2 + $0x168] sm:$0xff]  ;;  %v877_v55 = vld [vmem:[#allocation2 + $0x160] sm:$0xff]  ;;  %s2286_s15 = sshll.u32 %s583_s26, 4  ;;  %s3528_s22 = scalar_lea.vmem %s3527_s20, 512  ;;  %s4028_s15 = int_to_ptr.vmem [resolvable:$true] %s2286_s15 }
  0x6f   : > { %2800 = vmatprep.subr.mxu1 %v656_v13  ;;  %2763 = vmatpush3.msra.mxu0 %v687_v12  ;;  %v640_v50 = vsel %vm635_vm1, %v637_v39, %v639_v44  ;;  %v641_v52 = vsel %vm635_vm1, %v639_v44, %v630_v36  ;;  %v671_v54 = vsel %vm665_vm0, %v669_v42, %v663_v31  ;;  %v876_v56 = vld [vmem:[#allocation2 + $0x158] sm:$0xff]  ;;  %v875_v57 = vld [vmem:[#allocation2 + $0x150] sm:$0xff]  ;;  %v874_v58 = vld [vmem:[#allocation2 + $0x148] sm:$0xff]  ;;  %s3522_s28 = scalar_lea.vmem %s4028_s15, 256  ;;  %p3529_p1 = scmp.lt.s32.totalorder %s4028_s15, %s3527_s20 }
  0x70   : > { %2801 = vmatpush3.msra.mxu1 %v656_v13  ;;  %2764 = vmatprep.subr.mxu0 %v686_v14  ;;  %v873_v59 = vld [vmem:[#allocation2 + $0x140] sm:$0xff]  ;;  %v872_v60 = vld [vmem:[#allocation2 + $0x138] sm:$0xff]  ;;  %v871_v61 = vld [vmem:[#allocation2 + $0x130] sm:$0xff]  ;;  %p3523_p11 = scmp.ne.s32.totalorder %s4028_s15, %s3522_s28  ;;  %p3530_p5 = scmp.lt.s32.totalorder %s3528_s22, %s3522_s28 }
  0x71   : > { %2802 = vmatprep.subr.mxu1 %v655_v15  ;;  %2765 = vmatpush3.msra.mxu0 %v686_v14  ;;  %v870_v62 = vld [vmem:[#allocation2 + $0x128] sm:$0xff]  ;;  %v869_v63 = vld [vmem:[#allocation2 + $0x120] sm:$0xff]  ;;  %v868_v0 = vld [vmem:[#allocation2 + $0x118] sm:$0xff] }
  0x72   : > { %2803 = vmatpush3.msra.mxu1 %v655_v15  ;;  %2766 = vmatprep.subr.mxu0 %v685_v16  ;;  %v867_v1 = vld [vmem:[#allocation2 + $0x110] sm:$0xff]  ;;  %v866_v2 = vld [vmem:[#allocation2 + $0x108] sm:$0xff]  ;;  %v865_v3 = vld [vmem:[#allocation2 + $0x100] sm:$0xff]  ;;  %p3524_p13 = pnand %p3523_p11, %p3737_p4  ;;  %p3531_p3 = por %p3530_p5, %p3529_p1 }
  0x73   : > { %2804 = vmatprep.subr.mxu1 %v654_v17  ;;  %2767 = vmatpush3.msra.mxu0 %v685_v16  ;;  %v1051_v4 = vld [vmem:[#allocation5 + $0xf8] sm:$0xff]  ;;  %v1050_v6 = vld [vmem:[#allocation5 + $0xf0] sm:$0xff]  ;;  %v1049_v8 = vld [vmem:[#allocation5 + $0xe8] sm:$0xff] }
  0x74   : > { %2805 = vmatpush3.msra.mxu1 %v654_v17  ;;  %2768 = vmatprep.subr.mxu0 %v684_v18  ;;  %v1021_v5 = vld [vmem:[#allocation5 + $0x78] sm:$0xff]  ;;  %v1020_v7 = vld [vmem:[#allocation5 + $0x70] sm:$0xff]  ;;  %v1019_v9 = vld [vmem:[#allocation5 + $0x68] sm:$0xff]  ;;  %p3525_p0 = pneg %p3524_p13 }
  0x75   : > { %2806 = vmatprep.subr.mxu1 %v653_v19  ;;  %2769 = vmatpush3.msra.mxu0 %v684_v18  ;;  %v1048_v10 = vld [vmem:[#allocation5 + $0xe0] sm:$0xff]  ;;  %v1047_v12 = vld [vmem:[#allocation5 + $0xd8] sm:$0xff]  ;;  %v1046_v14 = vld [vmem:[#allocation5 + $0xd0] sm:$0xff] }
  0x76   : > { %2807 = vmatpush3.msra.mxu1 %v653_v19  ;;  %2770 = vmatprep.subr.mxu0 %v683_v20  ;;  %v1018_v11 = vld [vmem:[#allocation5 + $0x60] sm:$0xff]  ;;  %v1017_v13 = vld [vmem:[#allocation5 + $0x58] sm:$0xff]  ;;  %v1016_v15 = vld [vmem:[#allocation5 + $0x50] sm:$0xff]  ;;  %p3532_p6 = pnand %p3531_p3, %p3525_p0 }
  0x77   : > { %2808 = vmatprep.subr.mxu1 %v652_v21  ;;  %2771 = vmatpush3.msra.mxu0 %v683_v20  ;;  %v1045_v16 = vld [vmem:[#allocation5 + $0xc8] sm:$0xff]  ;;  %v1044_v18 = vld [vmem:[#allocation5 + $0xc0] sm:$0xff]  ;;  %v1043_v20 = vld [vmem:[#allocation5 + $0xb8] sm:$0xff] }
  0x78   : > { %2809 = vmatpush3.msra.mxu1 %v652_v21  ;;  %2772 = vmatprep.subr.mxu0 %v682_v22  ;;  %v1015_v17 = vld [vmem:[#allocation5 + $0x48] sm:$0xff]  ;;  %v1014_v19 = vld [vmem:[#allocation5 + $0x40] sm:$0xff]  ;;  %v1013_v21 = vld [vmem:[#allocation5 + $0x38] sm:$0xff] }
  0x79   : > { %2810 = vmatprep.subr.mxu1 %v651_v23  ;;  %2773 = vmatpush3.msra.mxu0 %v682_v22  ;;  %v1042_v22 = vld [vmem:[#allocation5 + $0xb0] sm:$0xff]  ;;  %v1039_v31 = vld [vmem:[#allocation5 + $0x98] sm:$0xff]  ;;  %v1037_v36 = vld [vmem:[#allocation5 + $0x88] sm:$0xff] }
  0x7a   : > { %2811 = vmatpush3.msra.mxu1 %v651_v23  ;;  %2774 = vmatprep.subr.mxu0 %v681_v24  ;;  %v1012_v23 = vld [vmem:[#allocation5 + $0x30] sm:$0xff]  ;;  %v1009_v32 = vld [vmem:[#allocation5 + $0x18] sm:$0xff]  ;;  %v1007_v37 = vld [vmem:[#allocation5 + $0x8] sm:$0xff] }
  0x7b   : > { %2812 = vmatprep.subr.mxu1 %v650_v25  ;;  %2775 = vmatpush3.msra.mxu0 %v681_v24  ;;  %v1041_v24 = vld [vmem:[#allocation5 + $0xa8] sm:$0xff]  ;;  %v1036_v38 = vld [vmem:[#allocation5 + $0x80] sm:$0xff] }
  0x7c   : > { %2813 = vmatpush3.msra.mxu1 %v650_v25  ;;  %2776 = vmatprep.subr.mxu0 %v680_v28  ;;  %v1011_v25 = vld [vmem:[#allocation5 + $0x28] sm:$0xff]  ;;  %v1006_v39 = vld [vmem:[#allocation5] sm:$0xff] }
  0x7d   : > { %2814 = vmatprep.subr.mxu1 %v649_v29  ;;  %2777 = vmatpush3.msra.mxu0 %v680_v28  ;;  %v1040_v28 = vld [vmem:[#allocation5 + $0xa0] sm:$0xff] }
  0x7e   : > { %2815 = vmatpush3.msra.mxu1 %v649_v29  ;;  %2778 = vmatprep.subr.mxu0 %v679_v34  ;;  %v1010_v29 = vld [vmem:[#allocation5 + $0x20] sm:$0xff] }
  0x7f   : > { %2816 = vmatprep.subr.mxu1 %v648_v35  ;;  %2779 = vmatpush3.msra.mxu0 %v679_v34  ;;  %v1038_v34 = vld [vmem:[#allocation5 + $0x90] sm:$0xff] }
  0x80   : > { %2817 = vmatpush3.msra.mxu1 %v648_v35  ;;  %2780 = vmatprep.subr.mxu0 %v678_v40  ;;  %v1008_v35 = vld [vmem:[#allocation5 + $0x10] sm:$0xff] }
  0x81   : > { %2818 = vmatprep.subr.mxu1 %v647_v41  ;;  %2781 = vmatpush3.msra.mxu0 %v678_v40  ;;  %v1238_v40 = vld [vmem:[#allocation5 + $0x178] sm:$0xff] }
  0x82   : > { %2782 = vmatprep.mubr.f32.mxu0 %v676_v43  ;;  %2819 = vmatpush3.msra.mxu1 %v647_v41  ;;  %v1354_v41 = vld [vmem:[%s4086_s6 + $0x78] sm:$0xff] }
  0x83   : > { %2820 = vmatprep.mubr.f32.mxu1 %v646_v45  ;;  %2783 = vmatmul.mubr.f32.vlgmr.msra.gmra.mxu0 %v668_v46 }
  0x84   : > { %2821 = vmatmul.mubr.f32.vlgmr.msra.gmra.mxu1 %v638_v47  ;;  %2826 = vmatprep.subr.mxu0 %v880_v48 }
  0x85   : > { %2785 = vmatprep.mubr.f32.mxu0 %v670_v49  ;;  %2827 = vmatpush3.msra.mxu0 %v880_v48 }
  0x86   : > { %2823 = vmatprep.mubr.f32.mxu1 %v640_v50  ;;  %2828 = vmatprep.subr.mxu0 %v879_v51 }
  0x87   : > { %2829 = vmatpush3.msra.mxu0 %v879_v51  ;;  %2864 = vmatprep.subr.mxu1 %v1051_v4  ;;  %v2456_v51 = vld [vmem:[%s4083_s3] ss:$0 sm:$0xff] }
  0x88   : > { %2824 = vmatmul.mubr.f32.gmra.mxu1 %v641_v52  ;;  %2830 = vmatprep.subr.mxu0 %v878_v53 }
  0x89   : > { %2786 = vmatmul.mubr.f32.gmra.mxu0 %v671_v54  ;;  %2865 = vmatpush3.msra.mxu1 %v1051_v4 }
  0x8a   : > { %2831 = vmatpush3.msra.mxu0 %v878_v53  ;;  %2858 = vmatprep.mubr.f32.mxu0 %v3848_v27 }
  0x8b   : > { %2832 = vmatprep.subr.mxu0 %v877_v55  ;;  %2866 = vmatprep.subr.mxu1 %v1050_v6 }
  0x8c   : > { %2833 = vmatpush3.msra.mxu0 %v877_v55  ;;  %2867 = vmatpush3.msra.mxu1 %v1050_v6 }
  0x8d   : > { %2834 = vmatprep.subr.mxu0 %v876_v56  ;;  %2868 = vmatprep.subr.mxu1 %v1049_v8 }
  0x8e   : > { %2835 = vmatpush3.msra.mxu0 %v876_v56  ;;  %2869 = vmatpush3.msra.mxu1 %v1049_v8 }
  0x8f   : > { %2836 = vmatprep.subr.mxu0 %v875_v57  ;;  %2870 = vmatprep.subr.mxu1 %v1048_v10 }
  0x90   : > { %2837 = vmatpush3.msra.mxu0 %v875_v57  ;;  %2871 = vmatpush3.msra.mxu1 %v1048_v10 }
  0x91   : > { %2838 = vmatprep.subr.mxu0 %v874_v58  ;;  %2872 = vmatprep.subr.mxu1 %v1047_v12 }
  0x92   : > { %2839 = vmatpush3.msra.mxu0 %v874_v58  ;;  %2873 = vmatpush3.msra.mxu1 %v1047_v12 }
  0x93   : > { %2840 = vmatprep.subr.mxu0 %v873_v59  ;;  %2874 = vmatprep.subr.mxu1 %v1046_v14 }
  0x94   : > { %2841 = vmatpush3.msra.mxu0 %v873_v59  ;;  %2875 = vmatpush3.msra.mxu1 %v1046_v14 }
  0x95   : > { %2842 = vmatprep.subr.mxu0 %v872_v60  ;;  %2876 = vmatprep.subr.mxu1 %v1045_v16 }
  0x96   : > { %2843 = vmatpush3.msra.mxu0 %v872_v60  ;;  %2877 = vmatpush3.msra.mxu1 %v1045_v16 }
  0x97   : > { %2844 = vmatprep.subr.mxu0 %v871_v61  ;;  %2878 = vmatprep.subr.mxu1 %v1044_v18 }
  0x98   : > { %2845 = vmatpush3.msra.mxu0 %v871_v61  ;;  %2879 = vmatpush3.msra.mxu1 %v1044_v18 }
  0x99   : > { %2846 = vmatprep.subr.mxu0 %v870_v62  ;;  %2880 = vmatprep.subr.mxu1 %v1043_v20 }
  0x9a   : > { %2847 = vmatpush3.msra.mxu0 %v870_v62  ;;  %2881 = vmatpush3.msra.mxu1 %v1043_v20 }
  0x9b   : > { %2848 = vmatprep.subr.mxu0 %v869_v63  ;;  %2882 = vmatprep.subr.mxu1 %v1042_v22 }
  0x9c   : > { %2849 = vmatpush3.msra.mxu0 %v869_v63  ;;  %2883 = vmatpush3.msra.mxu1 %v1042_v22  ;;  %v1353_v22 = vld [vmem:[%s4086_s6 + $0x70] sm:$0xff] }
  0x9d   : > { %2850 = vmatprep.subr.mxu0 %v868_v0  ;;  %2884 = vmatprep.subr.mxu1 %v1041_v24 }
  0x9e   : > { %2851 = vmatpush3.msra.mxu0 %v868_v0  ;;  %2885 = vmatpush3.msra.mxu1 %v1041_v24 }
  0x9f   : > { %2852 = vmatprep.subr.mxu0 %v867_v1  ;;  %2886 = vmatprep.subr.mxu1 %v1040_v28 }
  0xa0   : > { %2853 = vmatpush3.msra.mxu0 %v867_v1  ;;  %2887 = vmatpush3.msra.mxu1 %v1040_v28  ;;  %v1352_v28 = vld [vmem:[%s4086_s6 + $0x68] sm:$0xff] }
  0xa1   : > { %2854 = vmatprep.subr.mxu0 %v866_v2  ;;  %2888 = vmatprep.subr.mxu1 %v1039_v31 }
  0xa2   : > { %2855 = vmatpush3.msra.mxu0 %v866_v2  ;;  %2889 = vmatpush3.msra.mxu1 %v1039_v31 }
  0xa3   : > { %2856 = vmatprep.subr.mxu0 %v865_v3  ;;  %2890 = vmatprep.subr.mxu1 %v1038_v34 }
  0xa4   : > { %2857 = vmatpush3.msra.mxu0 %v865_v3  ;;  %2891 = vmatpush3.msra.mxu1 %v1038_v34  ;;  %v1351_v34 = vld [vmem:[%s4086_s6 + $0x60] sm:$0xff] }
  0xa5   : > { %2859 = vmatmul.mubr.f32.vlgmr.msra.gmra.mxu0 %v3850_v30  ;;  %2902 = vmatprep.subr.mxu0 %v1021_v5 }
  0xa6   : > { %2861 = vmatprep.mubr.f32.mxu0 %v3854_v33  ;;  %2903 = vmatpush3.msra.mxu0 %v1021_v5 }
  0xa7   : > { %2904 = vmatprep.subr.mxu0 %v1020_v7  ;;  %2892 = vmatprep.subr.mxu1 %v1037_v36 }
  0xa8   : > { %2905 = vmatpush3.msra.mxu0 %v1020_v7  ;;  %2893 = vmatpush3.msra.mxu1 %v1037_v36  ;;  %v1350_v36 = vld [vmem:[%s4086_s6 + $0x58] sm:$0xff] }
  0xa9   : > { %2862 = vmatmul.mubr.f32.gmra.mxu0 %v3846_v26  ;;  %2906 = vmatprep.subr.mxu0 %v1019_v9 }
  0xaa   : > { %2907 = vmatpush3.msra.mxu0 %v1019_v9  ;;  %2894 = vmatprep.subr.mxu1 %v1036_v38 }
  0xab   : > { %2908 = vmatprep.subr.mxu0 %v1018_v11  ;;  %2895 = vmatpush3.msra.mxu1 %v1036_v38  ;;  %v1349_v38 = vld [vmem:[%s4086_s6 + $0x50] sm:$0xff] }
  0xac   : > { %2909 = vmatpush3.msra.mxu0 %v1018_v11  ;;  %2940 = vmatprep.subr.mxu1 %v1238_v40 }
  0xad   : > { %2910 = vmatprep.subr.mxu0 %v1017_v13 }
  0xae   : > { %2911 = vmatpush3.msra.mxu0 %v1017_v13 }
  0xaf   : > { %2912 = vmatprep.subr.mxu0 %v1016_v15 }
  0xb0   : > { %2913 = vmatpush3.msra.mxu0 %v1016_v15 }
  0xb1   : > { %2914 = vmatprep.subr.mxu0 %v1015_v17 }
  0xb2   : > { %2915 = vmatpush3.msra.mxu0 %v1015_v17 }
  0xb3   : > { %2916 = vmatprep.subr.mxu0 %v1014_v19 }
  0xb4   : > { %2917 = vmatpush3.msra.mxu0 %v1014_v19 }
  0xb5   : > { %2918 = vmatprep.subr.mxu0 %v1013_v21 }
  0xb6   : > { %2919 = vmatpush3.msra.mxu0 %v1013_v21  ;;  %v1237_v21 = vld [vmem:[#allocation5 + $0x170] sm:$0xff] }
  0xb7   : > { %2920 = vmatprep.subr.mxu0 %v1012_v23 }
  0xb8   : > { %2921 = vmatpush3.msra.mxu0 %v1012_v23 }
  0xb9   : > { %2922 = vmatprep.subr.mxu0 %v1011_v25 }
  0xba   : > { %2923 = vmatpush3.msra.mxu0 %v1011_v25  ;;  %v1236_v25 = vld [vmem:[#allocation5 + $0x168] sm:$0xff] }
  0xbb   : > { %2924 = vmatprep.subr.mxu0 %v1010_v29 }
  0xbc   : > { %2925 = vmatpush3.msra.mxu0 %v1010_v29 }
  0xbd   : > { %2926 = vmatprep.subr.mxu0 %v1009_v32 }
  0xbe   : > { %2927 = vmatpush3.msra.mxu0 %v1009_v32  ;;  %v1235_v32 = vld [vmem:[#allocation5 + $0x160] sm:$0xff] }
  0xbf   : > { %2928 = vmatprep.subr.mxu0 %v1008_v35 }
  0xc0   : > { %2929 = vmatpush3.msra.mxu0 %v1008_v35  ;;  %v1234_v35 = vld [vmem:[#allocation5 + $0x158] sm:$0xff] }
  0xc1   : > { %2930 = vmatprep.subr.mxu0 %v1007_v37 }
  0xc2   : > { %2931 = vmatpush3.msra.mxu0 %v1007_v37  ;;  %v1233_v37 = vld [vmem:[#allocation5 + $0x150] sm:$0xff] }
  0xc3   : > { %2932 = vmatprep.subr.mxu0 %v1006_v39 }
  0xc4   : > { %2933 = vmatpush3.msra.mxu0 %v1006_v39  ;;  %v1232_v39 = vld [vmem:[#allocation5 + $0x148] sm:$0xff] }
  0xc5   : > { %2978 = vmatprep.subr.mxu0 %v1354_v41 }
 0x143   : > { %v2784_v42 = vpop.f32.mrf.mxu0 }
 0x144   : > { %v2822_v43 = vpop.f32.mrf.mxu1 }
 0x145   : > { %v760_v44 = vpop.f32.mrf.mxu0  ;;  %v851_v49 = vadd.f32 %v2822_v43, %v2784_v42  ;;  %v1347_v42 = vld [vmem:[%s4086_s6 + $0x40] sm:$0xff]  ;;  %v1230_v43 = vld [vmem:[#allocation5 + $0x138] sm:$0xff] }
 0x146   : > { %v845_v46 = vpop.f32.mrf.mxu1 }
 0x147   : > { %v846_v52 = vadd.f32 %v845_v46, %v760_v44  ;;  %v1346_v44 = vld [vmem:[%s4086_s6 + $0x38] sm:$0xff]  ;;  %v1345_v46 = vld [vmem:[%s4086_s6 + $0x30] sm:$0xff] }
 0x148   : > { %v2825_v47 = vpop.f32.mrf.mxu1 }
 0x149   : > { %v2787_v45 = vpop.f32.mrf.mxu0 }
 0x14a   : > { %v855_v54 = vpop.f32.mrf.mxu1  ;;  %v861_v56 = vadd.f32 %v2825_v47, %v2787_v45  ;;  %v1229_v45 = vld [vmem:[#allocation5 + $0x130] sm:$0xff]  ;;  %v1228_v47 = vld [vmem:[#allocation5 + $0x128] sm:$0xff] }
 0x14b   : > { %v770_v48 = vpop.f32.mrf.mxu0 }
 0x14c   : > { %v856_v60 = vadd.f32 %v855_v54, %v770_v48  ;;  %v1344_v48 = vld [vmem:[%s4086_s6 + $0x28] sm:$0xff]  ;;  %v1341_v54 = vld [vmem:[%s4086_s6 + $0x10] sm:$0xff] }
 0x165   : > { %v2860_v50 = vpop.f32.mrf.mxu0 }
 0x166   : > { %v967_v53 = vadd.f32 %v2860_v50, %v851_v49  ;;  %v1227_v49 = vld [vmem:[#allocation5 + $0x120] sm:$0xff] }
 0x167   : > { %v947_v55 = vpop.f32.mrf.mxu0  ;;  %v1343_v50 = vld [vmem:[%s4086_s6 + $0x20] sm:$0xff] }
 0x168   : > { %v978_v57 = vadd.f32 %v2456_v51, %v967_v53  ;;  %v966_v58 = vadd.f32 %v947_v55, %v846_v52  ;;  %v1342_v52 = vld [vmem:[%s4086_s6 + $0x18] sm:$0xff]  ;;  %v1225_v53 = vld [vmem:[#allocation5 + $0x110] sm:$0xff]  ;;  %v1224_v55 = vld [vmem:[#allocation5 + $0x108] sm:$0xff] }
 0x169   : > { %v2863_v59 = vpop.f32.mrf.mxu0 }
 0x16a   : > { %v982_v61 = vmax.f32 %v978_v57, 0.0  ;;  %v977_v62 = vadd.f32 %v2456_v51, %v966_v58  ;;  %v969_v63 = vadd.f32 %v2863_v59, %v861_v56  ;;  %v1340_v56 = vld [vmem:[%s4086_s6 + $0x8] sm:$0xff]  ;;  %v1223_v57 = vld [vmem:[#allocation5 + $0x100] sm:$0xff]  ;;  %v1522_v59 = vld [vmem:[#allocation7 + $0xf8] sm:$0xff] }
 0x16b   : > { %v957_v0 = vpop.f32.mrf.mxu0  ;;  %v1339_v58 = vld [vmem:[%s4086_s6] sm:$0xff] }
 0x16c   : > { %v3880_v1 = vmul.f32 0.0, %v982_v61  ;;  %v981_v2 = vmax.f32 %v977_v62, 0.0  ;;  %v980_v3 = vadd.f32 %v2456_v51, %v969_v63  ;;  %v968_v4 = vadd.f32 %v957_v0, %v856_v60  ;;  %v1492_v60 = vld [vmem:[#allocation7 + $0x78] sm:$0xff]  ;;  %v1521_v61 = vld [vmem:[#allocation7 + $0xf0] sm:$0xff]  ;;  %v1490_v63 = vld [vmem:[#allocation7 + $0x68] sm:$0xff] }
 0x16d   : > { %v1491_v62 = vld [vmem:[#allocation7 + $0x70] sm:$0xff]  ;;  %v1488_v0 = vld [vmem:[#allocation7 + $0x58] sm:$0xff] }
 0x16e   : > { %v985_v5 = vmul.f32 0.0, %v981_v2  ;;  %v3882_v6 = vmax.f32 %v980_v3, 0.0  ;;  %v996_v7 = vrot.slane %v3880_v1, 6  ;;  %v1025_v8 = vrot.slane %v3880_v1, 7  ;;  %v1487_v2 = vld [vmem:[#allocation7 + $0x50] sm:$0xff]  ;;  %v1516_v3 = vld [vmem:[#allocation7 + $0xc8] sm:$0xff] }
 0x16f   : > { %v979_v9 = vadd.f32 %v2456_v51, %v968_v4  ;;  %v1226_v51 = vld [vmem:[#allocation5 + $0x118] sm:$0xff]  ;;  %v1486_v4 = vld [vmem:[#allocation7 + $0x48] sm:$0xff] }
 0x170   : > { %v1022_v10 = vrot.slane %v3882_v6, 7  ;;  %v1024_v11 = vrot.slane %v985_v5, 7  ;;  %v990_v12 = vrot.slane %v3882_v6, 6  ;;  %v995_v13 = vrot.slane %v985_v5, 6 }
 0x171   : > { %v3888_v14 = vmax.f32 %v979_v9, 0.0  ;;  %v1513_v9 = vld [vmem:[#allocation7 + $0xb0] sm:$0xff] }
 0x172   : > { %v1034_v15 = vsel %vm665_vm0, %v1022_v10, %v1024_v11  ;;  %v1005_v16 = vsel %vm635_vm1, %v990_v12, %v995_v13  ;;  %v1026_v17 = vsel %vm665_vm0, %v1024_v11, %v1025_v8  ;;  %v997_v18 = vsel %vm635_vm1, %v995_v13, %v996_v7  ;;  %v1512_v11 = vld [vmem:[#allocation7 + $0xa8] sm:$0xff]  ;;  %v1511_v13 = vld [vmem:[#allocation7 + $0xa0] sm:$0xff] }
 0x173   : > { %2896 = vmatprep.mubr.f32.mxu1 %v1034_v15  ;;  %2934 = vmatprep.mubr.f32.mxu0 %v1005_v16  ;;  %v1027_v19 = vrot.slane %v3888_v14, 7  ;;  %v998_v20 = vrot.slane %v3888_v14, 6  ;;  %v1510_v15 = vld [vmem:[#allocation7 + $0x98] sm:$0xff] }
 0x174   : > { %2897 = vmatmul.mubr.f32.vlgmr.msra.gmra.mxu1 %v1026_v17  ;;  %2935 = vmatmul.mubr.f32.vlgmr.msra.gmra.mxu0 %v997_v18  ;;  %v1480_v16 = vld [vmem:[#allocation7 + $0x18] sm:$0xff]  ;;  %v1509_v17 = vld [vmem:[#allocation7 + $0x90] sm:$0xff] }
 0x175   : > { %2941 = vmatpush3.msra.mxu1 %v1238_v40  ;;  %2979 = vmatpush3.msra.mxu0 %v1354_v41  ;;  %v1028_v23 = vsel %vm665_vm0, %v1025_v8, %v1027_v19  ;;  %v999_v24 = vsel %vm635_vm1, %v996_v7, %v998_v20  ;;  %v1029_v29 = vsel %vm665_vm0, %v1027_v19, %v1022_v10  ;;  %v1348_v40 = vld [vmem:[%s4086_s6 + $0x48] sm:$0xff]  ;;  %v1231_v41 = vld [vmem:[#allocation5 + $0x140] sm:$0xff]  ;;  %v1514_v7 = vld [vmem:[#allocation7 + $0xb8] sm:$0xff] }
 0x176   : > { %2899 = vmatprep.mubr.f32.mxu1 %v1028_v23  ;;  %2937 = vmatprep.mubr.f32.mxu0 %v999_v24  ;;  %v1000_v31 = vsel %vm635_vm1, %v998_v20, %v990_v12  ;;  %v1484_v8 = vld [vmem:[#allocation7 + $0x38] sm:$0xff]  ;;  %v1483_v10 = vld [vmem:[#allocation7 + $0x30] sm:$0xff]  ;;  %v1482_v12 = vld [vmem:[#allocation7 + $0x28] sm:$0xff] }
 0x177   : > { %2942 = vmatprep.subr.mxu1 %v1237_v21  ;;  %2980 = vmatprep.subr.mxu0 %v1353_v22  ;;  %v1479_v18 = vld [vmem:[#allocation7 + $0x10] sm:$0xff]  ;;  %v1508_v19 = vld [vmem:[#allocation7 + $0x88] sm:$0xff]  ;;  %v3952_v23 = vld [vmem:[#allocation7 + $0x178] sm:$0xff] }
 0x178   : > { %2943 = vmatpush3.msra.mxu1 %v1237_v21  ;;  %2981 = vmatpush3.msra.mxu0 %v1353_v22  ;;  %v1478_v20 = vld [vmem:[#allocation7 + $0x8] sm:$0xff]  ;;  %v1507_v21 = vld [vmem:[#allocation7 + $0x80] sm:$0xff] }
 0x179   : > { %2944 = vmatprep.subr.mxu1 %v1236_v25  ;;  %2982 = vmatprep.subr.mxu0 %v1352_v28  ;;  %v1477_v22 = vld [vmem:[#allocation7] sm:$0xff] }
 0x17a   : > { %2900 = vmatmul.mubr.f32.gmra.mxu1 %v1029_v29  ;;  %2938 = vmatmul.mubr.f32.gmra.mxu0 %v1000_v31 }
 0x17b   : > { %2945 = vmatpush3.msra.mxu1 %v1236_v25  ;;  %2983 = vmatpush3.msra.mxu0 %v1352_v28 }
 0x17c   : > { %2946 = vmatprep.subr.mxu1 %v1235_v32  ;;  %2972 = vmatprep.mubr.f32.mxu1 %v985_v5  ;;  %v1515_v5 = vld [vmem:[#allocation7 + $0xc0] sm:$0xff] }
 0x17d   : > { %2984 = vmatprep.subr.mxu0 %v1351_v34  ;;  %2947 = vmatpush3.msra.mxu1 %v1235_v32 }
 0x17e   : > { %2985 = vmatpush3.msra.mxu0 %v1351_v34  ;;  %2948 = vmatprep.subr.mxu1 %v1234_v35 }
 0x17f   : > { %2986 = vmatprep.subr.mxu0 %v1350_v36  ;;  %2949 = vmatpush3.msra.mxu1 %v1234_v35 }
 0x180   : > { %2987 = vmatpush3.msra.mxu0 %v1350_v36  ;;  %2950 = vmatprep.subr.mxu1 %v1233_v37  ;;  %v2458_v36 = vld [vmem:[%s4087_s7] ss:$0 sm:$0xff] }
 0x181   : > { %2988 = vmatprep.subr.mxu0 %v1349_v38  ;;  %2951 = vmatpush3.msra.mxu1 %v1233_v37 }
 0x182   : > { %2989 = vmatpush3.msra.mxu0 %v1349_v38  ;;  %2952 = vmatprep.subr.mxu1 %v1232_v39 }
 0x183   : > { %2990 = vmatprep.subr.mxu0 %v1348_v40  ;;  %2953 = vmatpush3.msra.mxu1 %v1232_v39  ;;  %v2457_v39 = vld [vmem:[%s4085_s5] ss:$0 sm:$0xff] }
 0x184   : > { %2991 = vmatpush3.msra.mxu0 %v1348_v40  ;;  %2954 = vmatprep.subr.mxu1 %v1231_v41 }
 0x185   : > { %2992 = vmatprep.subr.mxu0 %v1347_v42  ;;  %2955 = vmatpush3.msra.mxu1 %v1231_v41 }
 0x186   : > { %2993 = vmatpush3.msra.mxu0 %v1347_v42  ;;  %2956 = vmatprep.subr.mxu1 %v1230_v43 }
 0x187   : > { %2994 = vmatprep.subr.mxu0 %v1346_v44  ;;  %2957 = vmatpush3.msra.mxu1 %v1230_v43 }
 0x188   : > { %2995 = vmatpush3.msra.mxu0 %v1346_v44  ;;  %2958 = vmatprep.subr.mxu1 %v1229_v45 }
 0x189   : > { %2996 = vmatprep.subr.mxu0 %v1345_v46  ;;  %2959 = vmatpush3.msra.mxu1 %v1229_v45 }
 0x18a   : > { %2997 = vmatpush3.msra.mxu0 %v1345_v46  ;;  %2960 = vmatprep.subr.mxu1 %v1228_v47 }
 0x18b   : > { %2998 = vmatprep.subr.mxu0 %v1344_v48  ;;  %2961 = vmatpush3.msra.mxu1 %v1228_v47 }
 0x18c   : > { %2999 = vmatpush3.msra.mxu0 %v1344_v48  ;;  %2962 = vmatprep.subr.mxu1 %v1227_v49 }
 0x18d   : > { %3000 = vmatprep.subr.mxu0 %v1343_v50  ;;  %2963 = vmatpush3.msra.mxu1 %v1227_v49 }
 0x18e   : > { %3001 = vmatpush3.msra.mxu0 %v1343_v50  ;;  %2964 = vmatprep.subr.mxu1 %v1226_v51 }
 0x18f   : > { %3002 = vmatprep.subr.mxu0 %v1342_v52  ;;  %2965 = vmatpush3.msra.mxu1 %v1226_v51 }
 0x190   : > { %3003 = vmatpush3.msra.mxu0 %v1342_v52  ;;  %2966 = vmatprep.subr.mxu1 %v1225_v53 }
 0x191   : > { %3004 = vmatprep.subr.mxu0 %v1341_v54  ;;  %2967 = vmatpush3.msra.mxu1 %v1225_v53 }
 0x192   : > { %3005 = vmatpush3.msra.mxu0 %v1341_v54  ;;  %2968 = vmatprep.subr.mxu1 %v1224_v55 }
 0x193   : > { %3006 = vmatprep.subr.mxu0 %v1340_v56  ;;  %2969 = vmatpush3.msra.mxu1 %v1224_v55 }
 0x194   : > { %3007 = vmatpush3.msra.mxu0 %v1340_v56  ;;  %2970 = vmatprep.subr.mxu1 %v1223_v57 }
 0x195   : > { %3008 = vmatprep.subr.mxu0 %v1339_v58  ;;  %2971 = vmatpush3.msra.mxu1 %v1223_v57 }
 0x196   : > { %3009 = vmatpush3.msra.mxu0 %v1339_v58  ;;  %3010 = vmatprep.mubr.f32.mxu0 %v3848_v27  ;;  %v1520_v27 = vld [vmem:[#allocation7 + $0xe8] sm:$0xff] }
 0x197   : > { %2973 = vmatmul.mubr.f32.vlgmr.msra.gmra.mxu1 %v3880_v1  ;;  %3011 = vmatmul.mubr.f32.vlgmr.msra.gmra.mxu0 %v3850_v30  ;;  %v1519_v30 = vld [vmem:[#allocation7 + $0xe0] sm:$0xff]  ;;  %v1517_v1 = vld [vmem:[#allocation7 + $0xd0] sm:$0xff] }
 0x198   : > { %2975 = vmatprep.mubr.f32.mxu1 %v3888_v14  ;;  %3013 = vmatprep.mubr.f32.mxu0 %v3854_v33  ;;  %v1489_v33 = vld [vmem:[#allocation7 + $0x60] sm:$0xff] }
 0x199   : > { %3016 = vmatprep.subr.mxu1 %v1522_v59  ;;  %3054 = vmatprep.subr.mxu0 %v1492_v60  ;;  %v1481_v14 = vld [vmem:[#allocation7 + $0x20] sm:$0xff] }
 0x19a   : > { %3017 = vmatpush3.msra.mxu1 %v1522_v59  ;;  %3055 = vmatpush3.msra.mxu0 %v1492_v60 }
 0x19b   : > { %2976 = vmatmul.mubr.f32.gmra.mxu1 %v3882_v6  ;;  %3014 = vmatmul.mubr.f32.gmra.mxu0 %v3846_v26  ;;  %v1518_v26 = vld [vmem:[#allocation7 + $0xd8] sm:$0xff]  ;;  %v1485_v6 = vld [vmem:[#allocation7 + $0x40] sm:$0xff] }
 0x19c   : > { %3018 = vmatprep.subr.mxu1 %v1521_v61  ;;  %3056 = vmatprep.subr.mxu0 %v1491_v62 }
 0x19d   : > { %3019 = vmatpush3.msra.mxu1 %v1521_v61  ;;  %3057 = vmatpush3.msra.mxu0 %v1491_v62 }
 0x19e   : > { %3020 = vmatprep.subr.mxu1 %v1520_v27  ;;  %3058 = vmatprep.subr.mxu0 %v1490_v63 }
 0x19f   : > { %3021 = vmatpush3.msra.mxu1 %v1520_v27  ;;  %3059 = vmatpush3.msra.mxu0 %v1490_v63 }
 0x1a0   : > { %3022 = vmatprep.subr.mxu1 %v1519_v30  ;;  %3060 = vmatprep.subr.mxu0 %v1489_v33 }
 0x1a1   : > { %3023 = vmatpush3.msra.mxu1 %v1519_v30  ;;  %3061 = vmatpush3.msra.mxu0 %v1489_v33 }
 0x1a2   : > { %3024 = vmatprep.subr.mxu1 %v1518_v26  ;;  %3062 = vmatprep.subr.mxu0 %v1488_v0 }
 0x1a3   : > { %3025 = vmatpush3.msra.mxu1 %v1518_v26  ;;  %3063 = vmatpush3.msra.mxu0 %v1488_v0 }
 0x1a4   : > { %3026 = vmatprep.subr.mxu1 %v1517_v1  ;;  %3064 = vmatprep.subr.mxu0 %v1487_v2 }
 0x1a5   : > { %3027 = vmatpush3.msra.mxu1 %v1517_v1  ;;  %3065 = vmatpush3.msra.mxu0 %v1487_v2 }
 0x1a6   : > { %3028 = vmatprep.subr.mxu1 %v1516_v3  ;;  %3066 = vmatprep.subr.mxu0 %v1486_v4 }
 0x1a7   : > { %3029 = vmatpush3.msra.mxu1 %v1516_v3  ;;  %3067 = vmatpush3.msra.mxu0 %v1486_v4 }
 0x1a8   : > { %3030 = vmatprep.subr.mxu1 %v1515_v5  ;;  %3068 = vmatprep.subr.mxu0 %v1485_v6 }
 0x1a9   : > { %3031 = vmatpush3.msra.mxu1 %v1515_v5  ;;  %3069 = vmatpush3.msra.mxu0 %v1485_v6 }
 0x1aa   : > { %3032 = vmatprep.subr.mxu1 %v1514_v7  ;;  %3070 = vmatprep.subr.mxu0 %v1484_v8 }
 0x1ab   : > { %3033 = vmatpush3.msra.mxu1 %v1514_v7  ;;  %3071 = vmatpush3.msra.mxu0 %v1484_v8 }
 0x1ac   : > { %3034 = vmatprep.subr.mxu1 %v1513_v9  ;;  %3072 = vmatprep.subr.mxu0 %v1483_v10 }
 0x1ad   : > { %3035 = vmatpush3.msra.mxu1 %v1513_v9  ;;  %3073 = vmatpush3.msra.mxu0 %v1483_v10 }
 0x1ae   : > { %3036 = vmatprep.subr.mxu1 %v1512_v11  ;;  %3074 = vmatprep.subr.mxu0 %v1482_v12 }
 0x1af   : > { %3037 = vmatpush3.msra.mxu1 %v1512_v11  ;;  %3075 = vmatpush3.msra.mxu0 %v1482_v12 }
 0x1b0   : > { %3038 = vmatprep.subr.mxu1 %v1511_v13  ;;  %3076 = vmatprep.subr.mxu0 %v1481_v14 }
 0x1b1   : > { %3039 = vmatpush3.msra.mxu1 %v1511_v13  ;;  %3077 = vmatpush3.msra.mxu0 %v1481_v14 }
 0x1b2   : > { %3040 = vmatprep.subr.mxu1 %v1510_v15  ;;  %3078 = vmatprep.subr.mxu0 %v1480_v16 }
 0x1b3   : > { %3041 = vmatpush3.msra.mxu1 %v1510_v15  ;;  %3079 = vmatpush3.msra.mxu0 %v1480_v16 }
 0x1b4   : > { %3042 = vmatprep.subr.mxu1 %v1509_v17  ;;  %3080 = vmatprep.subr.mxu0 %v1479_v18 }
 0x1b5   : > { %3043 = vmatpush3.msra.mxu1 %v1509_v17  ;;  %3081 = vmatpush3.msra.mxu0 %v1479_v18  ;;  %v1708_v18 = vld [vmem:[#allocation7 + $0x170] sm:$0xff] }
 0x1b6   : > { %3044 = vmatprep.subr.mxu1 %v1508_v19  ;;  %3082 = vmatprep.subr.mxu0 %v1478_v20 }
 0x1b7   : > { %3045 = vmatpush3.msra.mxu1 %v1508_v19  ;;  %3083 = vmatpush3.msra.mxu0 %v1478_v20  ;;  %v1707_v19 = vld [vmem:[#allocation7 + $0x168] sm:$0xff] }
 0x1b8   : > { %3046 = vmatprep.subr.mxu1 %v1507_v21  ;;  %3084 = vmatprep.subr.mxu0 %v1477_v22 }
 0x1b9   : > { %3047 = vmatpush3.msra.mxu1 %v1507_v21  ;;  %3085 = vmatpush3.msra.mxu0 %v1477_v22  ;;  %v1706_v21 = vld [vmem:[#allocation7 + $0x160] sm:$0xff] }
 0x1ba   : > { %3092 = vmatprep.subr.mxu1 %v3952_v23 }
 0x234   : > { %v2898_v24 = vpop.f32.mrf.mxu1  ;;  %v2936_v25 = vpop.f32.mrf.mxu0 }
 0x235   : > { %v1209_v37 = vadd.f32 %v2936_v25, %v2898_v24  ;;  %v1705_v24 = vld [vmem:[#allocation7 + $0x158] sm:$0xff]  ;;  %v1703_v25 = vld [vmem:[#allocation7 + $0x148] sm:$0xff] }
 0x236   : > { %v1118_v28 = vpop.f32.mrf.mxu1  ;;  %v1203_v29 = vpop.f32.mrf.mxu0 }
 0x237   : > { %v1204_v41 = vadd.f32 %v1203_v29, %v1118_v28  ;;  %v1702_v28 = vld [vmem:[#allocation7 + $0x140] sm:$0xff]  ;;  %v1701_v29 = vld [vmem:[#allocation7 + $0x138] sm:$0xff] }
 0x23a   : > { %v2901_v31 = vpop.f32.mrf.mxu1  ;;  %v2939_v32 = vpop.f32.mrf.mxu0 }
 0x23b   : > { %v1219_v46 = vadd.f32 %v2939_v32, %v2901_v31  ;;  %v1700_v31 = vld [vmem:[#allocation7 + $0x130] sm:$0xff]  ;;  %v1699_v32 = vld [vmem:[#allocation7 + $0x128] sm:$0xff] }
 0x23c   : > { %v1128_v34 = vpop.f32.mrf.mxu1  ;;  %v1213_v35 = vpop.f32.mrf.mxu0 }
 0x23d   : > { %v1214_v49 = vadd.f32 %v1213_v35, %v1128_v34  ;;  %v1698_v34 = vld [vmem:[#allocation7 + $0x120] sm:$0xff]  ;;  %v1697_v35 = vld [vmem:[#allocation7 + $0x118] sm:$0xff] }
 0x257   : > { %v2974_v38 = vpop.f32.mrf.mxu1  ;;  %v3012_v40 = vpop.f32.mrf.mxu0 }
 0x258   : > { %v1325_v42 = vadd.f32 %v2974_v38, %v1209_v37  ;;  %v1434_v43 = vadd.f32 %v3012_v40, %v2458_v36  ;;  %v1695_v37 = vld [vmem:[#allocation7 + $0x108] sm:$0xff]  ;;  %v1694_v38 = vld [vmem:[#allocation7 + $0x100] sm:$0xff]  ;;  %v1850_v40 = vld [vmem:[#allocation8 + $0x78] sm:$0xff] }
 0x259   : > { %v1305_v44 = vpop.f32.mrf.mxu1  ;;  %v1428_v45 = vpop.f32.mrf.mxu0 }
 0x25a   : > { %v1336_v47 = vadd.f32 %v2457_v39, %v1325_v42  ;;  %v1324_v48 = vadd.f32 %v1305_v44, %v1204_v41  ;;  %v1429_v50 = vadd.f32 %v2458_v36, %v1428_v45  ;;  %v1879_v41 = vld [vmem:[#allocation8 + $0xf0] sm:$0xff]  ;;  %v1848_v44 = vld [vmem:[#allocation8 + $0x68] sm:$0xff]  ;;  %v1877_v45 = vld [vmem:[#allocation8 + $0xe0] sm:$0xff] }
 0x25b   : > { %v2977_v51 = vpop.f32.mrf.mxu1  ;;  %v3015_v52 = vpop.f32.mrf.mxu0  ;;  %v1849_v42 = vld [vmem:[#allocation8 + $0x70] sm:$0xff] }
 0x25c   : > { %v1448_v53 = vadd.f32 %v1434_v43, %v1336_v47  ;;  %v1335_v54 = vadd.f32 %v2457_v39, %v1324_v48  ;;  %v1327_v55 = vadd.f32 %v2977_v51, %v1219_v46  ;;  %v1444_v56 = vadd.f32 %v3015_v52, %v2458_v36  ;;  %v1878_v43 = vld [vmem:[#allocation8 + $0xe8] sm:$0xff]  ;;  %v1847_v46 = vld [vmem:[#allocation8 + $0x60] sm:$0xff]  ;;  %v1876_v47 = vld [vmem:[#allocation8 + $0xd8] sm:$0xff] }
 0x25d   : > { %v1315_v57 = vpop.f32.mrf.mxu1  ;;  %v1438_v58 = vpop.f32.mrf.mxu0  ;;  %v1846_v48 = vld [vmem:[#allocation8 + $0x58] sm:$0xff]  ;;  %v1874_v51 = vld [vmem:[#allocation8 + $0xc8] sm:$0xff] }
 0x25e   : > { %v1452_v59 = vmax.f32 %v1448_v53, 0.0  ;;  %v1447_v60 = vadd.f32 %v1429_v50, %v1335_v54  ;;  %v1338_v61 = vadd.f32 %v2457_v39, %v1327_v55  ;;  %v1326_v62 = vadd.f32 %v1315_v57, %v1214_v49  ;;  %v1875_v49 = vld [vmem:[#allocation8 + $0xd0] sm:$0xff]  ;;  %v1844_v52 = vld [vmem:[#allocation8 + $0x48] sm:$0xff]  ;;  %v1873_v53 = vld [vmem:[#allocation8 + $0xc0] sm:$0xff] }
 0x25f   : > { %v1439_v27 = vadd.f32 %v2458_v36, %v1438_v58  ;;  %v1696_v36 = vld [vmem:[#allocation7 + $0x110] sm:$0xff]  ;;  %v1843_v54 = vld [vmem:[#allocation8 + $0x40] sm:$0xff]  ;;  %v1872_v55 = vld [vmem:[#allocation8 + $0xb8] sm:$0xff] }
 0x260   : > { %v3961_v63 = vmul.f32 0.0, %v1452_v59  ;;  %v1451_v30 = vmax.f32 %v1447_v60, 0.0  ;;  %v1450_v33 = vadd.f32 %v1444_v56, %v1338_v61  ;;  %v1337_v26 = vadd.f32 %v2457_v39, %v1326_v62  ;;  %v1880_v39 = vld [vmem:[#allocation8 + $0xf8] sm:$0xff]  ;;  %v1845_v50 = vld [vmem:[#allocation8 + $0x50] sm:$0xff]  ;;  %v1870_v59 = vld [vmem:[#allocation8 + $0xa8] sm:$0xff] }
 0x261   : > { %3130 = vmatprep.subr.mxu0 %v1880_v39  ;;  %v1842_v56 = vld [vmem:[#allocation8 + $0x38] sm:$0xff]  ;;  %v1871_v57 = vld [vmem:[#allocation8 + $0xb0] sm:$0xff]  ;;  %v1840_v60 = vld [vmem:[#allocation8 + $0x28] sm:$0xff] }
 0x262   : > { %v3963_v0 = vmul.f32 0.0, %v1451_v30  ;;  %v3965_v1 = vmax.f32 %v1450_v33, 0.0  ;;  %v1449_v2 = vadd.f32 %v1439_v27, %v1337_v26  ;;  %v1496_v3 = vrot.slane %v3961_v63, 6  ;;  %v1841_v58 = vld [vmem:[#allocation8 + $0x30] sm:$0xff]  ;;  %v1869_v61 = vld [vmem:[#allocation8 + $0xa0] sm:$0xff]  ;;  %v1868_v27 = vld [vmem:[#allocation8 + $0x98] sm:$0xff] }
 0x263   : > { %v1467_v9 = vrot.slane %v3961_v63, 4  ;;  %v1839_v62 = vld [vmem:[#allocation8 + $0x20] sm:$0xff]  ;;  %v1838_v30 = vld [vmem:[#allocation8 + $0x18] sm:$0xff]  ;;  %v1867_v33 = vld [vmem:[#allocation8 + $0x90] sm:$0xff] }
 0x264   : > { %v3968_v4 = vmax.f32 %v1449_v2, 0.0  ;;  %v1493_v5 = vrot.slane %v3965_v1, 6  ;;  %v1495_v6 = vrot.slane %v3963_v0, 6  ;;  %v1460_v7 = vrot.slane %v3965_v1, 4  ;;  %v1837_v26 = vld [vmem:[#allocation8 + $0x10] sm:$0xff]  ;;  %v1866_v2 = vld [vmem:[#allocation8 + $0x88] sm:$0xff] }
 0x265   : > { %v1466_v8 = vrot.slane %v3963_v0, 4 }
 0x266   : > { %v1505_v10 = vsel %vm635_vm1, %v1493_v5, %v1495_v6  ;;  %v1497_v11 = vsel %vm635_vm1, %v1495_v6, %v1496_v3  ;;  %v1498_v12 = vrot.slane %v3968_v4, 6  ;;  %v1469_v13 = vrot.slane %v3968_v4, 4  ;;  %v1835_v6 = vld [vmem:[#allocation8] sm:$0xff] }
 0x267   : > { %3048 = vmatprep.mubr.f32.mxu1 %v1505_v10  ;;  %v1476_v14 = vsel %vm1465_vm2, %v1460_v7, %v1466_v8  ;;  %v1468_v15 = vsel %vm1465_vm2, %v1466_v8, %v1467_v9  ;;  %v2173_v8 = vld [vmem:[#allocation10 + $0x78] sm:$0xff] }
 0x268   : > { %3086 = vmatprep.mubr.f32.mxu0 %v1476_v14  ;;  %3049 = vmatmul.mubr.f32.vlgmr.msra.gmra.mxu1 %v1497_v11  ;;  %v1499_v16 = vsel %vm635_vm1, %v1496_v3, %v1498_v12  ;;  %v1470_v17 = vsel %vm1465_vm2, %v1467_v9, %v1469_v13  ;;  %v1500_v20 = vsel %vm635_vm1, %v1498_v12, %v1493_v5  ;;  %v1836_v3 = vld [vmem:[#allocation8 + $0x8] sm:$0xff]  ;;  %v1865_v5 = vld [vmem:[#allocation8 + $0x80] sm:$0xff] }
 0x269   : > { %3087 = vmatmul.mubr.f32.vlgmr.msra.gmra.mxu0 %v1468_v15  ;;  %3093 = vmatpush3.msra.mxu1 %v3952_v23  ;;  %v1471_v22 = vsel %vm1465_vm2, %v1469_v13, %v1460_v7  ;;  %v1704_v23 = vld [vmem:[#allocation7 + $0x150] sm:$0xff]  ;;  %v2063_v7 = vld [vmem:[#allocation8 + $0x178] sm:$0xff] }
 0x26a   : > { %3051 = vmatprep.mubr.f32.mxu1 %v1499_v16  ;;  %3089 = vmatprep.mubr.f32.mxu0 %v1470_v17 }
 0x26b   : > { %3094 = vmatprep.subr.mxu1 %v1708_v18  ;;  %3131 = vmatpush3.msra.mxu0 %v1880_v39 }
 0x26c   : > { %3095 = vmatpush3.msra.mxu1 %v1708_v18  ;;  %3132 = vmatprep.subr.mxu0 %v1879_v41  ;;  %v2459_v18 = vld [vmem:[%s4089_s9] ss:$0 sm:$0xff] }
 0x26d   : > { %3096 = vmatprep.subr.mxu1 %v1707_v19  ;;  %3052 = vmatmul.mubr.f32.gmra.mxu1 %v1500_v20 }
 0x26e   : > { %3090 = vmatmul.mubr.f32.gmra.mxu0 %v1471_v22  ;;  %3097 = vmatpush3.msra.mxu1 %v1707_v19 }
 0x26f   : > { %3098 = vmatprep.subr.mxu1 %v1706_v21  ;;  %3124 = vmatprep.mubr.f32.mxu1 %v3963_v0 }
 0x270   : > { %3099 = vmatpush3.msra.mxu1 %v1706_v21  ;;  %3133 = vmatpush3.msra.mxu0 %v1879_v41 }
 0x271   : > { %3100 = vmatprep.subr.mxu1 %v1705_v24  ;;  %3134 = vmatprep.subr.mxu0 %v1878_v43 }
 0x272   : > { %3101 = vmatpush3.msra.mxu1 %v1705_v24  ;;  %3135 = vmatpush3.msra.mxu0 %v1878_v43 }
 0x273   : > { %3102 = vmatprep.subr.mxu1 %v1704_v23  ;;  %3136 = vmatprep.subr.mxu0 %v1877_v45 }
 0x274   : > { %3103 = vmatpush3.msra.mxu1 %v1704_v23  ;;  %3137 = vmatpush3.msra.mxu0 %v1877_v45 }
 0x275   : > { %3104 = vmatprep.subr.mxu1 %v1703_v25  ;;  %3138 = vmatprep.subr.mxu0 %v1876_v47 }
 0x276   : > { %3105 = vmatpush3.msra.mxu1 %v1703_v25  ;;  %3139 = vmatpush3.msra.mxu0 %v1876_v47 }
 0x277   : > { %3106 = vmatprep.subr.mxu1 %v1702_v28  ;;  %3140 = vmatprep.subr.mxu0 %v1875_v49 }
 0x278   : > { %3107 = vmatpush3.msra.mxu1 %v1702_v28  ;;  %3141 = vmatpush3.msra.mxu0 %v1875_v49 }
 0x279   : > { %3108 = vmatprep.subr.mxu1 %v1701_v29  ;;  %3142 = vmatprep.subr.mxu0 %v1874_v51 }
 0x27a   : > { %3109 = vmatpush3.msra.mxu1 %v1701_v29  ;;  %3143 = vmatpush3.msra.mxu0 %v1874_v51 }
 0x27b   : > { %3110 = vmatprep.subr.mxu1 %v1700_v31  ;;  %3144 = vmatprep.subr.mxu0 %v1873_v53 }
 0x27c   : > { %3111 = vmatpush3.msra.mxu1 %v1700_v31  ;;  %3145 = vmatpush3.msra.mxu0 %v1873_v53 }
 0x27d   : > { %3112 = vmatprep.subr.mxu1 %v1699_v32  ;;  %3146 = vmatprep.subr.mxu0 %v1872_v55 }
 0x27e   : > { %3113 = vmatpush3.msra.mxu1 %v1699_v32  ;;  %3147 = vmatpush3.msra.mxu0 %v1872_v55 }
 0x27f   : > { %3114 = vmatprep.subr.mxu1 %v1698_v34  ;;  %3148 = vmatprep.subr.mxu0 %v1871_v57 }
 0x280   : > { %3115 = vmatpush3.msra.mxu1 %v1698_v34  ;;  %3149 = vmatpush3.msra.mxu0 %v1871_v57  ;;  %v2172_v57 = vld [vmem:[#allocation10 + $0x70] sm:$0xff] }
 0x281   : > { %3116 = vmatprep.subr.mxu1 %v1697_v35  ;;  %3150 = vmatprep.subr.mxu0 %v1870_v59 }
 0x282   : > { %3117 = vmatpush3.msra.mxu1 %v1697_v35  ;;  %3151 = vmatpush3.msra.mxu0 %v1870_v59 }
 0x283   : > { %3118 = vmatprep.subr.mxu1 %v1696_v36  ;;  %3152 = vmatprep.subr.mxu0 %v1869_v61 }
 0x284   : > { %3119 = vmatpush3.msra.mxu1 %v1696_v36  ;;  %3153 = vmatpush3.msra.mxu0 %v1869_v61  ;;  %v2171_v61 = vld [vmem:[#allocation10 + $0x68] sm:$0xff] }
 0x285   : > { %3120 = vmatprep.subr.mxu1 %v1695_v37  ;;  %3154 = vmatprep.subr.mxu0 %v1868_v27 }
 0x286   : > { %3121 = vmatpush3.msra.mxu1 %v1695_v37  ;;  %3155 = vmatpush3.msra.mxu0 %v1868_v27 }
 0x287   : > { %3122 = vmatprep.subr.mxu1 %v1694_v38  ;;  %3156 = vmatprep.subr.mxu0 %v1867_v33 }
 0x288   : > { %3123 = vmatpush3.msra.mxu1 %v1694_v38  ;;  %3157 = vmatpush3.msra.mxu0 %v1867_v33  ;;  %v2170_v33 = vld [vmem:[#allocation10 + $0x60] sm:$0xff] }
 0x289   : > { %3125 = vmatmul.mubr.f32.vlgmr.msra.gmra.mxu1 %v3961_v63  ;;  %3168 = vmatprep.subr.mxu1 %v1850_v40 }
 0x28a   : > { %3127 = vmatprep.mubr.f32.mxu1 %v3968_v4  ;;  %3169 = vmatpush3.msra.mxu1 %v1850_v40 }
 0x28b   : > { %3170 = vmatprep.subr.mxu1 %v1849_v42  ;;  %3158 = vmatprep.subr.mxu0 %v1866_v2 }
 0x28c   : > { %3171 = vmatpush3.msra.mxu1 %v1849_v42  ;;  %3159 = vmatpush3.msra.mxu0 %v1866_v2  ;;  %v2169_v2 = vld [vmem:[#allocation10 + $0x58] sm:$0xff] }
 0x28d   : > { %3128 = vmatmul.mubr.f32.gmra.mxu1 %v3965_v1  ;;  %3172 = vmatprep.subr.mxu1 %v1848_v44 }
 0x28e   : > { %3173 = vmatpush3.msra.mxu1 %v1848_v44  ;;  %3160 = vmatprep.subr.mxu0 %v1865_v5 }
 0x28f   : > { %3174 = vmatprep.subr.mxu1 %v1847_v46  ;;  %3161 = vmatpush3.msra.mxu0 %v1865_v5  ;;  %v2168_v5 = vld [vmem:[#allocation10 + $0x50] sm:$0xff] }
 0x290   : > { %3175 = vmatpush3.msra.mxu1 %v1847_v46  ;;  %3206 = vmatprep.subr.mxu0 %v2063_v7 }
 0x291   : > { %3176 = vmatprep.subr.mxu1 %v1846_v48 }
 0x292   : > { %3177 = vmatpush3.msra.mxu1 %v1846_v48 }
 0x293   : > { %3178 = vmatprep.subr.mxu1 %v1845_v50 }
 0x294   : > { %3179 = vmatpush3.msra.mxu1 %v1845_v50 }
 0x295   : > { %3180 = vmatprep.subr.mxu1 %v1844_v52 }
 0x296   : > { %3181 = vmatpush3.msra.mxu1 %v1844_v52 }
 0x297   : > { %3182 = vmatprep.subr.mxu1 %v1843_v54 }
 0x298   : > { %3183 = vmatpush3.msra.mxu1 %v1843_v54 }
 0x299   : > { %3184 = vmatprep.subr.mxu1 %v1842_v56 }
 0x29a   : > { %3185 = vmatpush3.msra.mxu1 %v1842_v56  ;;  %v2062_v56 = vld [vmem:[#allocation8 + $0x170] sm:$0xff] }
 0x29b   : > { %3186 = vmatprep.subr.mxu1 %v1841_v58 }
 0x29c   : > { %3187 = vmatpush3.msra.mxu1 %v1841_v58 }
 0x29d   : > { %3188 = vmatprep.subr.mxu1 %v1840_v60 }
 0x29e   : > { %3189 = vmatpush3.msra.mxu1 %v1840_v60  ;;  %v2061_v60 = vld [vmem:[#allocation8 + $0x168] sm:$0xff] }
 0x29f   : > { %3190 = vmatprep.subr.mxu1 %v1839_v62 }
 0x2a0   : > { %3191 = vmatpush3.msra.mxu1 %v1839_v62 }
 0x2a1   : > { %3192 = vmatprep.subr.mxu1 %v1838_v30 }
 0x2a2   : > { %3193 = vmatpush3.msra.mxu1 %v1838_v30  ;;  %v2060_v30 = vld [vmem:[#allocation8 + $0x160] sm:$0xff] }
 0x2a3   : > { %3194 = vmatprep.subr.mxu1 %v1837_v26 }
 0x2a4   : > { %3195 = vmatpush3.msra.mxu1 %v1837_v26  ;;  %v2059_v26 = vld [vmem:[#allocation8 + $0x158] sm:$0xff] }
 0x2a5   : > { %3196 = vmatprep.subr.mxu1 %v1836_v3 }
 0x2a6   : > { %3197 = vmatpush3.msra.mxu1 %v1836_v3  ;;  %v2058_v3 = vld [vmem:[#allocation8 + $0x150] sm:$0xff] }
 0x2a7   : > { %3198 = vmatprep.subr.mxu1 %v1835_v6 }
 0x2a8   : > { %3199 = vmatpush3.msra.mxu1 %v1835_v6  ;;  %v2057_v6 = vld [vmem:[#allocation8 + $0x148] sm:$0xff] }
 0x2a9   : > { %3244 = vmatprep.subr.mxu1 %v2173_v8 }
 0x328   : > { %v3050_v9 = vpop.f32.mrf.mxu1 }
 0x329   : > { %v3088_v10 = vpop.f32.mrf.mxu0 }
 0x32a   : > { %v1589_v11 = vpop.f32.mrf.mxu1  ;;  %v1680_v16 = vadd.f32 %v3088_v10, %v3050_v9  ;;  %v2166_v9 = vld [vmem:[#allocation10 + $0x40] sm:$0xff]  ;;  %v2165_v10 = vld [vmem:[#allocation10 + $0x38] sm:$0xff] }
 0x32b   : > { %v1674_v12 = vpop.f32.mrf.mxu0 }
 0x32c   : > { %v1675_v19 = vadd.f32 %v1674_v12, %v1589_v11  ;;  %v2054_v11 = vld [vmem:[#allocation8 + $0x130] sm:$0xff] }
 0x32d   : > { %v3053_v13 = vpop.f32.mrf.mxu1  ;;  %v2164_v12 = vld [vmem:[#allocation10 + $0x30] sm:$0xff] }
 0x32e   : > { %v3091_v14 = vpop.f32.mrf.mxu0 }
 0x32f   : > { %v1599_v15 = vpop.f32.mrf.mxu1  ;;  %v1690_v24 = vadd.f32 %v3091_v14, %v3053_v13  ;;  %v2053_v13 = vld [vmem:[#allocation8 + $0x128] sm:$0xff] }
 0x330   : > { %v1684_v21 = vpop.f32.mrf.mxu0  ;;  %v2163_v14 = vld [vmem:[#allocation10 + $0x28] sm:$0xff] }
 0x331   : > { %v1685_v29 = vadd.f32 %v1684_v21, %v1599_v15  ;;  %v2052_v15 = vld [vmem:[#allocation8 + $0x120] sm:$0xff]  ;;  %v2049_v21 = vld [vmem:[#allocation8 + $0x108] sm:$0xff] }
 0x349   : > { %v3126_v17 = vpop.f32.mrf.mxu1 }
 0x34a   : > { %v1796_v20 = vadd.f32 %v3126_v17, %v1680_v16  ;;  %v2162_v16 = vld [vmem:[#allocation10 + $0x20] sm:$0xff]  ;;  %v2051_v17 = vld [vmem:[#allocation8 + $0x118] sm:$0xff] }
 0x34b   : > { %v1776_v22 = vpop.f32.mrf.mxu1 }
 0x34c   : > { %v1807_v23 = vadd.f32 %v2459_v18, %v1796_v20  ;;  %v1795_v25 = vadd.f32 %v1776_v22, %v1675_v19  ;;  %v2050_v19 = vld [vmem:[#allocation8 + $0x110] sm:$0xff]  ;;  %v2159_v22 = vld [vmem:[#allocation10 + $0x8] sm:$0xff] }
 0x34d   : > { %v3129_v28 = vpop.f32.mrf.mxu1  ;;  %v2160_v20 = vld [vmem:[#allocation10 + $0x10] sm:$0xff] }
 0x34e   : > { %v1811_v31 = vmax.f32 %v1807_v23, 0.0  ;;  %v1806_v32 = vadd.f32 %v2459_v18, %v1795_v25  ;;  %v1798_v34 = vadd.f32 %v3129_v28, %v1690_v24  ;;  %v2048_v24 = vld [vmem:[#allocation8 + $0x100] sm:$0xff] }
 0x34f   : > { %v1786_v35 = vpop.f32.mrf.mxu1  ;;  %v2158_v23 = vld [vmem:[#allocation10] sm:$0xff] }
 0x350   : > { %v3993_v36 = vmul.f32 0.0, %v1811_v31  ;;  %v1810_v37 = vmax.f32 %v1806_v32, 0.0  ;;  %v1809_v38 = vadd.f32 %v2459_v18, %v1798_v34  ;;  %v1797_v39 = vadd.f32 %v1786_v35, %v1685_v29 }
 0x352   : > { %v1814_v40 = vmul.f32 0.0, %v1810_v37  ;;  %v3995_v41 = vmax.f32 %v1809_v38, 0.0  ;;  %v1825_v42 = vrot.slane %v3993_v36, 4  ;;  %v1854_v43 = vrot.slane %v3993_v36, 6 }
 0x353   : > { %v1808_v44 = vadd.f32 %v2459_v18, %v1797_v39  ;;  %v2161_v18 = vld [vmem:[#allocation10 + $0x18] sm:$0xff] }
 0x354   : > { %v1851_v45 = vrot.slane %v3995_v41, 6  ;;  %v1853_v46 = vrot.slane %v1814_v40, 6  ;;  %v1819_v47 = vrot.slane %v3995_v41, 4  ;;  %v1824_v48 = vrot.slane %v1814_v40, 4 }
 0x355   : > { %v4001_v49 = vmax.f32 %v1808_v44, 0.0 }
 0x356   : > { %v1863_v50 = vsel %vm635_vm1, %v1851_v45, %v1853_v46  ;;  %v1834_v51 = vsel %vm1465_vm2, %v1819_v47, %v1824_v48  ;;  %v1855_v52 = vsel %vm635_vm1, %v1853_v46, %v1854_v43  ;;  %v1826_v53 = vsel %vm1465_vm2, %v1824_v48, %v1825_v42 }
 0x357   : > { %3162 = vmatprep.mubr.f32.mxu0 %v1863_v50  ;;  %3200 = vmatprep.mubr.f32.mxu1 %v1834_v51  ;;  %v1856_v54 = vrot.slane %v4001_v49, 6  ;;  %v1827_v55 = vrot.slane %v4001_v49, 4 }
 0x358   : > { %3163 = vmatmul.mubr.f32.vlgmr.msra.gmra.mxu0 %v1855_v52  ;;  %3201 = vmatmul.mubr.f32.vlgmr.msra.gmra.mxu1 %v1826_v53 }
 0x359   : > { %3207 = vmatpush3.msra.mxu0 %v2063_v7  ;;  %3245 = vmatpush3.msra.mxu1 %v2173_v8  ;;  %v1857_v58 = vsel %vm635_vm1, %v1854_v43, %v1856_v54  ;;  %v1828_v59 = vsel %vm1465_vm2, %v1825_v42, %v1827_v55  ;;  %v1858_v62 = vsel %vm635_vm1, %v1856_v54, %v1851_v45  ;;  %v2167_v7 = vld [vmem:[#allocation10 + $0x48] sm:$0xff]  ;;  %v2056_v8 = vld [vmem:[#allocation8 + $0x140] sm:$0xff] }
 0x35a   : > { %3165 = vmatprep.mubr.f32.mxu0 %v1857_v58  ;;  %3203 = vmatprep.mubr.f32.mxu1 %v1828_v59  ;;  %v1829_v27 = vsel %vm1465_vm2, %v1827_v55, %v1819_v47  ;;  %v2461_v42 = vld [vmem:[%s4093_s13] ss:$0 sm:$0xff] }
 0x35b   : > { %3208 = vmatprep.subr.mxu0 %v2062_v56  ;;  %3246 = vmatprep.subr.mxu1 %v2172_v57 }
 0x35c   : > { %3209 = vmatpush3.msra.mxu0 %v2062_v56  ;;  %3247 = vmatpush3.msra.mxu1 %v2172_v57 }
 0x35d   : > { %3210 = vmatprep.subr.mxu0 %v2061_v60  ;;  %3248 = vmatprep.subr.mxu1 %v2171_v61 }
 0x35e   : > { %3166 = vmatmul.mubr.f32.gmra.mxu0 %v1858_v62  ;;  %3204 = vmatmul.mubr.f32.gmra.mxu1 %v1829_v27 }
 0x35f   : > { %3211 = vmatpush3.msra.mxu0 %v2061_v60  ;;  %3249 = vmatpush3.msra.mxu1 %v2171_v61 }
 0x360   : > { %3212 = vmatprep.subr.mxu0 %v2060_v30  ;;  %3238 = vmatprep.mubr.f32.mxu0 %v1814_v40 }
 0x361   : > { %3250 = vmatprep.subr.mxu1 %v2170_v33  ;;  %3276 = vmatprep.mubr.f32.mxu1 %v3963_v0  ;;  %v2055_v0 = vld [vmem:[#allocation8 + $0x138] sm:$0xff] }
 0x362   : > { %3213 = vmatpush3.msra.mxu0 %v2060_v30  ;;  %3251 = vmatpush3.msra.mxu1 %v2170_v33 }
 0x363   : > { %3214 = vmatprep.subr.mxu0 %v2059_v26  ;;  %3252 = vmatprep.subr.mxu1 %v2169_v2 }
 0x364   : > { %3215 = vmatpush3.msra.mxu0 %v2059_v26  ;;  %3253 = vmatpush3.msra.mxu1 %v2169_v2 }
 0x365   : > { %3216 = vmatprep.subr.mxu0 %v2058_v3  ;;  %3254 = vmatprep.subr.mxu1 %v2168_v5 }
 0x366   : > { %3217 = vmatpush3.msra.mxu0 %v2058_v3  ;;  %3255 = vmatpush3.msra.mxu1 %v2168_v5 }
 0x367   : > { %3218 = vmatprep.subr.mxu0 %v2057_v6  ;;  %3256 = vmatprep.subr.mxu1 %v2167_v7 }
 0x368   : > { %3219 = vmatpush3.msra.mxu0 %v2057_v6  ;;  %3257 = vmatpush3.msra.mxu1 %v2167_v7 }
 0x369   : > { %3220 = vmatprep.subr.mxu0 %v2056_v8  ;;  %3258 = vmatprep.subr.mxu1 %v2166_v9 }
 0x36a   : > { %3221 = vmatpush3.msra.mxu0 %v2056_v8  ;;  %3259 = vmatpush3.msra.mxu1 %v2166_v9 }
 0x36b   : > { %3222 = vmatprep.subr.mxu0 %v2055_v0  ;;  %3260 = vmatprep.subr.mxu1 %v2165_v10 }
 0x36c   : > { %3223 = vmatpush3.msra.mxu0 %v2055_v0  ;;  %3261 = vmatpush3.msra.mxu1 %v2165_v10 }
 0x36d   : > { %3224 = vmatprep.subr.mxu0 %v2054_v11  ;;  %3262 = vmatprep.subr.mxu1 %v2164_v12 }
 0x36e   : > { %3225 = vmatpush3.msra.mxu0 %v2054_v11  ;;  %3263 = vmatpush3.msra.mxu1 %v2164_v12 }
 0x36f   : > { %3226 = vmatprep.subr.mxu0 %v2053_v13  ;;  %3264 = vmatprep.subr.mxu1 %v2163_v14 }
 0x370   : > { %3227 = vmatpush3.msra.mxu0 %v2053_v13  ;;  %3265 = vmatpush3.msra.mxu1 %v2163_v14 }
 0x371   : > { %3228 = vmatprep.subr.mxu0 %v2052_v15  ;;  %3266 = vmatprep.subr.mxu1 %v2162_v16 }
 0x372   : > { %3229 = vmatpush3.msra.mxu0 %v2052_v15  ;;  %3267 = vmatpush3.msra.mxu1 %v2162_v16 }
 0x373   : > { %3230 = vmatprep.subr.mxu0 %v2051_v17  ;;  %3268 = vmatprep.subr.mxu1 %v2161_v18 }
 0x374   : > { %3231 = vmatpush3.msra.mxu0 %v2051_v17  ;;  %3269 = vmatpush3.msra.mxu1 %v2161_v18 }
 0x375   : > { %3232 = vmatprep.subr.mxu0 %v2050_v19  ;;  %3270 = vmatprep.subr.mxu1 %v2160_v20 }
 0x376   : > { %3233 = vmatpush3.msra.mxu0 %v2050_v19  ;;  %3271 = vmatpush3.msra.mxu1 %v2160_v20 }
 0x377   : > { %3234 = vmatprep.subr.mxu0 %v2049_v21  ;;  %3272 = vmatprep.subr.mxu1 %v2159_v22 }
 0x378   : > { %3235 = vmatpush3.msra.mxu0 %v2049_v21  ;;  %3273 = vmatpush3.msra.mxu1 %v2159_v22 }
 0x379   : > { %3236 = vmatprep.subr.mxu0 %v2048_v24  ;;  %3274 = vmatprep.subr.mxu1 %v2158_v23 }
 0x37a   : > { %3237 = vmatpush3.msra.mxu0 %v2048_v24  ;;  %3275 = vmatpush3.msra.mxu1 %v2158_v23 }
 0x37b   : > { %3239 = vmatmul.mubr.f32.vlgmr.msra.gmra.mxu0 %v3993_v36  ;;  %3277 = vmatmul.mubr.f32.vlgmr.msra.gmra.mxu1 %v3961_v63 }
 0x37c   : > { %3241 = vmatprep.mubr.f32.mxu0 %v4001_v49  ;;  %3279 = vmatprep.mubr.f32.mxu1 %v3968_v4 }
 0x37f   : > { %3242 = vmatmul.mubr.f32.gmra.mxu0 %v3995_v41  ;;  %3280 = vmatmul.mubr.f32.gmra.mxu1 %v3965_v1  ;;  %v2460_v1 = vld [vmem:[%s4091_s11] ss:$0 sm:$0xff] }
 0x418   : > { %v3164_v25 = vpop.f32.mrf.mxu0  ;;  %v3202_v28 = vpop.f32.mrf.mxu1 }
 0x41a   : > { %v1947_v29 = vpop.f32.mrf.mxu0  ;;  %v2030_v31 = vpop.f32.mrf.mxu1 }
 0x41e   : > { %v3167_v32 = vpop.f32.mrf.mxu0  ;;  %v3205_v34 = vpop.f32.mrf.mxu1 }
 0x41f   : > { %v2044_v40 = vadd.f32 %v3205_v34, %v3167_v32 }
 0x420   : > { %v1955_v35 = vpop.f32.mrf.mxu0  ;;  %v2038_v37 = vpop.f32.mrf.mxu1 }
 0x421   : > { %v2039_v43 = vadd.f32 %v2038_v37, %v1955_v35 }
 0x43b   : > { %v3240_v36 = vpop.f32.mrf.mxu0  ;;  %v3278_v38 = vpop.f32.mrf.mxu1 }
 0x43d   : > { %v2130_v63 = vpop.f32.mrf.mxu0  ;;  %v2247_v39 = vpop.f32.mrf.mxu1 }
 0x43f   : > { %v3243_v4 = vpop.f32.mrf.mxu0  ;;  %v3281_v41 = vpop.f32.mrf.mxu1 }
 0x440   : > { %v2148_v44 = vadd.f32 %v3243_v4, %v2044_v40  ;;  %v2261_v48 = vadd.f32 %v3281_v41, %v2461_v42 }
 0x441   : > { %v2138_v45 = vpop.f32.mrf.mxu0  ;;  %v2255_v46 = vpop.f32.mrf.mxu1 }
 0x442   : > { %v2157_v47 = vadd.f32 %v2460_v1, %v2148_v44  ;;  %v2147_v49 = vadd.f32 %v2138_v45, %v2039_v43  ;;  %v2256_v52 = vadd.f32 %v2461_v42, %v2255_v46 }
 0x444   : > { %v2265_v50 = vadd.f32 %v2261_v48, %v2157_v47  ;;  %v2156_v51 = vadd.f32 %v2460_v1, %v2147_v49 }
 0x446   : > { %v2267_v53 = vmax.f32 %v2265_v50, 0.0  ;;  %v2264_v54 = vadd.f32 %v2256_v52, %v2156_v51 }
 0x448   : > { %2269 = vst [vmem:[%s583_s26 + $0x8] sm:$0xff] %v2267_v53  ;;  %v2266_v55 = vmax.f32 %v2264_v54, 0.0 }
 0x44a   : > { %2268 = vst [vmem:[%s583_s26] sm:$0xff] %v2266_v55 }
 0x44b   : > { %3535 = shalt.err (!%p3532_p6)
}
 0x44c   : > { %s3536_s19 = scalar_lea.hbm %s4033_s21, 256  ;;  %s3540_s14 = scalar_lea.hbm %s4119_s4, 512 }
 0x44d   : > { %p3537_p8 = scmp.ne.s32.totalorder %s4033_s21, %s3536_s19  ;;  %p3541_p12 = scmp.lt.s32.totalorder %s4033_s21, %s4119_s4 }
 0x44e   : > { %p3542_p2 = scmp.lt.s32.totalorder %s3540_s14, %s3536_s19 }
 0x44f   : > { %p3538_p7 = pnand %p3537_p8, %p3737_p4 }
 0x450   : > { %p3543_p10 = por %p3542_p2, %p3541_p12 }
 0x451   : > { %p3539_p9 = pneg %p3538_p7 }
 0x453   : > { %p3544_p11 = pnand %p3543_p10, %p3539_p9 }
 0x455   : > { %3547 = shalt.err (!%p3544_p11)
}
 0x456   : > { %s3620_s24 = smov 128   ;;  %s3621_s29 = smov 8  }
 0x457   : > { %3302 = dma.vmem_to_hbm [thread:$0]  (%p3737_p4), %s4028_s15, 256, %s4033_s21, %s4035_s27, %s3620_s24, %s3620_s24, %s3621_s29  }
 0x458 PF: > { %s4120_s28 = sld [smem:[#allocation19_spill]] }
 0x459   : > { %s4121_s16 = sld [smem:[#allocation16_spill]] }
 0x45a   : > { %s4122_s20 = sld [smem:[#allocation21_spill]] }
 0x45e   : > { %p3334_p13 = scmp.ge.s32.totalorder %s4120_s28, 2 }
 0x45f   : > { %s2301_s22 = sand.u32 1, %s4121_s16  }
 0x460   : > { %p4123_p0 = scmp.ne.s32.totalorder %s4122_s20, 0  ;;  %s2302_s19 = scalar_lea.sflag [#allocation4], %s2301_s22 }
 0x462   : > { %p3321_p1 = pnand %p3334_p13, %p4123_p0 }
 0x464   : > { %p3322_p5 = pneg %p3321_p1 }
 0x466   : > { %3585 = dma.done.wait (%p3322_p5), %s2302_s19, 256  }
 0x467   : > { %3587 = vsyncadd (%p3322_p5), %s2302_s19, 4294967040  ;;  %s30_s18 = sadd.s32 1, %s4120_s28   ;;  %s4124_s17 = sld [smem:[#allocation17_spill]] }
 0x468   : > { %p27_p3 = scmp.ge.s32.totalorder %s30_s18, 4   ;;  %s4125_s15 = sld [smem:[#allocation22_spill]] }
 0x469   : > { %s4126_s16 = sld [smem:[#allocation18_spill]]  ;;  %s4128_s29 = smov %s3594_s30 }
 0x46a   : > { %s4127_s23 = sld [smem:[#allocation20_spill]] }
 0x46c   :  { %29 = sbr.rel (!%p27_p3) target bundleno = 10 (0xa), region = 143 }
 0x46d   : > { %s4129_s30 = smov %s4124_s17 }
 0x470   : > { %s4130_s17 = smov %s4127_s23 }
 0x471   :  { %2307 = vsyncpa [#allocation3], 1 }
 0x472   :  { %2309 = vsyncpa [#allocation3 + $0x1], 1 }
 0x473   :  { %2310 = vsyncpa [#allocation6], 1 }
 0x474   :  { %2311 = vsyncpa [#allocation9], 1 }
 0x475   :  { %2312 = vsyncpa [#allocation4], 1 }
 0x476   :  { %2314 = vsyncpa [#allocation4 + $0x1], 1 }

</bundles_post_ra>
